<compile_context>
chip_gen: v7x
topology: tpu7x:2x2x1
jax: 0.10.0
libtpu: 0.0.40
codegen_flags: <defaults>
</compile_context>

<pallas_src>
import math

import numpy as np
import jax
import jax.numpy as jnp
from jax import lax
from jax.experimental import pallas as pl
from jax.experimental.pallas import tpu as pltpu

SCALE = 2048 ** (-0.5)          # hard-coded in the PyTorch module (independent of dim)
GROUP = 192                     # hard-coded group size inside `catcher`
LN_EPS = 1e-5                   # nn.LayerNorm default eps
NUM_INSTANCE = 4                # self.num_instance
VMEM_LIMIT = 64 * 1024 * 1024   # explicit scoped-VMEM budget (<= physical on v5e/v6e/v7x)


# ---------------------------------------------------------------------------
# catcher: one fused kernel per batch element
# ---------------------------------------------------------------------------
def _catcher_kernel(x_ref, g_ref, wqt_ref, wgt_ref, out_ref):
    x = x_ref[0]                                   # (M, C)
    g = g_ref[0]                                   # (N, C)
    n, c = g.shape

    # q = x + mean_N(g); rel_q = q @ Wq^T   (g already VMEM-resident)
    mean_g = jnp.mean(g, axis=0, keepdims=True)
    rel_q = jnp.dot(x + mean_g, wqt_ref[...],
                    preferred_element_type=jnp.float32)            # (M, C)

    # 192-token group self-attention: all groups of this batch in one shot.
    gg = g.reshape(n // GROUP, GROUP, c)                           # (G, 192, C)
    sq = jnp.sum(gg * gg, axis=-1, keepdims=True)
    gn = gg * lax.rsqrt(jnp.maximum(sq, 1e-24))                    # F.normalize, eps=1e-12
    s = jnp.einsum('gik,gjk->gij', gn, gn,
                   preferred_element_type=jnp.float32) * SCALE     # last-dim contraction
    s = s - jnp.max(s, axis=-1, keepdims=True)
    e = jnp.exp(s)
    p = e * pl.reciprocal(jnp.sum(e, axis=-1, keepdims=True), approx=True)
    gp = jnp.einsum('gij,gjk->gik', p, gg,
                    preferred_element_type=jnp.float32).reshape(n, c)

    # rel_g computed while gp is still resident, then cross attention.
    rel_g = jnp.dot(gp, wgt_ref[...], preferred_element_type=jnp.float32)
    s2 = lax.dot_general(rel_q, rel_g, (((1,), (1,)), ((), ())),
                         preferred_element_type=jnp.float32) * SCALE   # (M, N)
    s2 = s2 - jnp.max(s2, axis=-1, keepdims=True)
    e2 = jnp.exp(s2)
    p2 = e2 * pl.reciprocal(jnp.sum(e2, axis=-1, keepdims=True), approx=True)
    out_ref[0] = jnp.dot(p2, gp, preferred_element_type=jnp.float32)


def catcher_forward(x, g, wq, wg):
    """x: (B, M, C) queries; g: (B, N, C); wq/wg: (C, C) torch (out, in) layout."""
    B, M, C = x.shape
    _, N, _ = g.shape
    # TODO(synk): if N % 192 != 0 the PyTorch reshape mixes tokens across batch
    # elements; that case needs a separate (non-fused) group-attention pass.
    assert N % GROUP == 0, "per-batch fusion requires N % 192 == 0"
    wqt = wq.T   # (C_in, C_out) so kernels do plain x @ W
    wgt = wg.T
    return pl.pallas_call(
        _catcher_kernel,
        out_shape=jax.ShapeDtypeStruct((B, M, C), jnp.float32),
        grid=(B,),
        in_specs=[pl.BlockSpec((1, M, C), lambda b: (b, 0, 0)),
                  pl.BlockSpec((1, N, C), lambda b: (b, 0, 0)),
                  pl.BlockSpec((C, C), lambda b: (0, 0)),
                  pl.BlockSpec((C, C), lambda b: (0, 0))],
        out_specs=pl.BlockSpec((1, M, C), lambda b: (b, 0, 0)),
        compiler_params=pltpu.CompilerParams(
            dimension_semantics=("parallel",),
            vmem_limit_bytes=VMEM_LIMIT),
    )(x, g, wqt, wgt)


# ---------------------------------------------------------------------------
# deltaor: one fused kernel per batch element
# ---------------------------------------------------------------------------
def _deltaor_kernel(x_ref, g_ref, xw_ref, xb_ref, gw_ref, gb_ref,
                    wqt_ref, wgt_ref, out_ref):
    x = x_ref[0]                                   # (M, C)
    g = g_ref[0]                                   # (P, C)

    def layer_norm(v, w, b):
        mu = jnp.mean(v, axis=-1, keepdims=True)
        d = v - mu
        var = jnp.mean(d * d, axis=-1, keepdims=True)
        return d * lax.rsqrt(var + LN_EPS) * w + b

    q = layer_norm(x, xw_ref[...], xb_ref[...])                       # (M, C)
    rel_q = jnp.dot(q, wqt_ref[...], preferred_element_type=jnp.float32)
    gsh = g - jnp.mean(x, axis=0, keepdims=True)                      # x resident -> in-kernel mean
    gn = layer_norm(gsh, gw_ref[...], gb_ref[...])                    # (P, C)
    rel_g = jnp.dot(gn, wgt_ref[...], preferred_element_type=jnp.float32)
    s = lax.dot_general(rel_q, rel_g, (((1,), (1,)), ((), ())),
                        preferred_element_type=jnp.float32) * SCALE   # (M, P)
    s = s - jnp.max(s, axis=-1, keepdims=True)
    e = jnp.exp(s)
    p = e * pl.reciprocal(jnp.sum(e, axis=-1, keepdims=True), approx=True)
    out_ref[0] = q + jnp.dot(p, gn, preferred_element_type=jnp.float32)


def deltaor_forward(x, g, params):
    """x: (B, M, C); g: (B, P, C); params dict: wq, wg, ln_x_w/b, ln_g_w/b."""
    B, M, C = x.shape
    _, P, _ = g.shape
    wqt = params['wq'].T
    wgt = params['wg'].T
    xw = params['ln_x_w'].reshape(1, C)
    xb = params['ln_x_b'].reshape(1, C)
    gw = params['ln_g_w'].reshape(1, C)
    gb = params['ln_g_b'].reshape(1, C)
    return pl.pallas_call(
        _deltaor_kernel,
        out_shape=jax.ShapeDtypeStruct((B, M, C), jnp.float32),
        grid=(B,),
        in_specs=[pl.BlockSpec((1, M, C), lambda b: (b, 0, 0)),
                  pl.BlockSpec((1, P, C), lambda b: (b, 0, 0)),
                  pl.BlockSpec((1, C), lambda b: (0, 0)),
                  pl.BlockSpec((1, C), lambda b: (0, 0)),
                  pl.BlockSpec((1, C), lambda b: (0, 0)),
                  pl.BlockSpec((1, C), lambda b: (0, 0)),
                  pl.BlockSpec((C, C), lambda b: (0, 0)),
                  pl.BlockSpec((C, C), lambda b: (0, 0))],
        out_specs=pl.BlockSpec((1, M, C), lambda b: (b, 0, 0)),
        compiler_params=pltpu.CompilerParams(
            dimension_semantics=("parallel",),
            vmem_limit_bytes=VMEM_LIMIT),
    )(x, g, xw, xb, gw, gb, wqt, wgt)


# ---------------------------------------------------------------------------
# Pure-JAX references for the sub-modules (mirror the PyTorch math exactly)
# ---------------------------------------------------------------------------
def _catcher_ref(x, g, wq, wg):
    B, N, C = g.shape
    q = x + g.mean(axis=1, keepdims=True)
    rel_q = q @ wq.T
    gg = g.reshape(B * N // GROUP, GROUP, C)
    nrm = jnp.sqrt(jnp.sum(gg * gg, axis=-1, keepdims=True))
    gn = gg / jnp.maximum(nrm, 1e-12)
    rel = jax.nn.softmax(jnp.einsum('gik,gjk->gij', gn, gn) * SCALE, axis=-1)
    gp = jnp.einsum('gij,gjk->gik', rel, gg).reshape(B, N, C)
    rel_g = gp @ wg.T
    rel = jax.nn.softmax(jnp.einsum('bmc,bnc->bmn', rel_q, rel_g) * SCALE, axis=-1)
    return jnp.einsum('bmn,bnc->bmc', rel, gp)


def _deltaor_ref(x, g, p):
    def ln(v, w, b):
        mu = v.mean(axis=-1, keepdims=True)
        var = ((v - mu) ** 2).mean(axis=-1, keepdims=True)
        return (v - mu) / jnp.sqrt(var + LN_EPS) * w + b
    q = ln(x, p['ln_x_w'], p['ln_x_b'])
    rel_q = q @ p['wq'].T
    g = g - x.mean(axis=1, keepdims=True)
    g = ln(g, p['ln_g_w'], p['ln_g_b'])
    rel_g = g @ p['wg'].T
    rel = jax.nn.softmax(jnp.einsum('bmc,bnc->bmn', rel_q, rel_g) * SCALE, axis=-1)
    return q + jnp.einsum('bmn,bnc->bmc', rel, g)


# ---------------------------------------------------------------------------
# circle_fine_grained_extractor forward (shared plumbing, pluggable backends)
# ---------------------------------------------------------------------------
def _extractor(params, x, sub, training, catcher_fn, deltaor_fn):
    B, C, H, W = x.shape
    HW = H * W
    sub = np.asarray(sub, dtype=bool)          # static (host-side) batch mask
    idx_v = np.where(sub)[0]
    idx_i = np.where(~sub)[0]
    nv, ni = len(idx_v), len(idx_i)

    x = x.reshape(B, C, HW).transpose(0, 2, 1)                      # (B, HW, C)

    q_num = params['query_v'].shape[1]
    qv = jnp.broadcast_to(params['query_v'], (B, q_num, C))
    qi = jnp.broadcast_to(params['query_i'], (B, q_num, C))
    query = jnp.concatenate([qv[idx_v], qi[idx_i]], axis=0)         # (B, q_num, C)
    proto = jnp.broadcast_to(params['prototype'],
                             (B,) + params['prototype'].shape[1:])  # (B, P, C)

    f_rel = catcher_fn(query, x, params['Q2R']['wq'], params['Q2R']['wg'])
    f_rel = jnp.concatenate([jnp.mean(x, axis=1, keepdims=True), f_rel], axis=1)

    parts, f_pro = [], None
    if nv > 0:
        f_pro = deltaor_fn(f_rel[idx_v], proto[idx_v], params['R2P_v'])
        parts.append(f_pro)
    if ni > 0:
        f_pro = deltaor_fn(f_rel[idx_i], proto[idx_i], params['R2P_i'])
        parts.append(f_pro)
    if len(parts) == 2:
        f_pro = jnp.concatenate(parts, axis=0)

    if not training:
        return f_rel, f_pro, None, None

    # ---- training-only branch (P2R correlation / reconstruction paths) ----
    assert B % NUM_INSTANCE == 0 and nv == B // 2 and ni == B // 2
    x_mate = jnp.broadcast_to(
        x.reshape(B // NUM_INSTANCE, 1, NUM_INSTANCE, HW, C),
        (B // NUM_INSTANCE, NUM_INSTANCE, NUM_INSTANCE, HW, C),
    ).reshape(B, NUM_INSTANCE * HW, C)
    x_mate = jnp.concatenate([x_mate[idx_i], x_mate[idx_v]], axis=0)
    f_cor = catcher_fn(f_pro, x_mate, params['P2R']['wq'], params['P2R']['wg'])

    index = (np.arange(B // 2) + NUM_INSTANCE) % (B // 2)
    x_v = jnp.concatenate([x[idx_v], x[idx_v][index]], axis=1)
    x_r = jnp.concatenate([x[idx_i], x[idx_i][index]], axis=1)
    x_cat = jnp.concatenate([x_v, x_r], axis=0)
    f_rec = catcher_fn(f_pro, x_cat, params['P2R']['wq'], params['P2R']['wg'])

    return f_rel, f_pro, f_rec, f_cor


def circle_extractor_forward(params, x, sub, training=True):
    return _extractor(params, x, sub, training, catcher_forward, deltaor_forward)


def circle_extractor_reference(params, x, sub, training=True):
    return _extractor(params, x, sub, training, _catcher_ref, _deltaor_ref)


# ---------------------------------------------------------------------------
if __name__ == "__main__":
    # Scaled-down shapes consistent with the module:
    #   H*W must be a multiple of 192 (catcher group size), C lane-dense (128).
    #   q_num=8 queries, p_num=256 prototype tokens stand in for (1024, 2048).
    B, C, H, W = 4, 128, 16, 12
    q_num, p_num = 8, 256
    sub = np.array([True, True, False, False])

    key = jax.random.PRNGKey(0)
    ks = jax.random.split(key, 16)
    bound = 1.0 / math.sqrt(C)

    def lin(k):
        return jax.random.uniform(k, (C, C), jnp.float32, -bound, bound)

    def deltaor_params(k):
        k1, k2, k3, k4, k5, k6 = jax.random.split(k, 6)
        return {'wq': lin(k1), 'wg': lin(k2),
                'ln_x_w': 1.0 + 0.1 * jax.random.normal(k3, (C,), jnp.float32),
                'ln_x_b': 0.05 * jax.random.normal(k4, (C,), jnp.float32),
                'ln_g_w': 1.0 + 0.1 * jax.random.normal(k5, (C,), jnp.float32),
                'ln_g_b': 0.05 * jax.random.normal(k6, (C,), jnp.float32)}

    query_v = 0.02 * jax.random.normal(ks[0], (1, q_num, C), jnp.float32)
    params = {
        'query_v': query_v,
        'query_i': query_v,                 # tied at init, like the PyTorch module
        'prototype': 0.8 * jax.random.normal(ks[1], (1, p_num, C), jnp.float32),
        'Q2R': {'wq': lin(ks[2]), 'wg': lin(ks[3])},
        'P2R': {'wq': lin(ks[4]), 'wg': lin(ks[5])},
        'R2P_v': deltaor_params(ks[6]),
        'R2P_i': deltaor_params(ks[7]),
    }

    x = jax.random.normal(ks[8], (B, C, H, W), jnp.float32)

    outs = circle_extractor_forward(params, x, sub, training=True)
    outs = jax.block_until_ready(outs)
    refs = circle_extractor_reference(params, x, sub, training=True)

    # approx-reciprocal softmax denominators (EUP) -> slightly relaxed tolerance
    for name, o, r in zip(("f_rel", "f_pro", "f_rec", "f_cor"), outs, refs):
        assert o.shape == r.shape, (name, o.shape, r.shape)
        assert jnp.allclose(o, r, rtol=1e-2, atol=1e-3), f"mismatch in {name}"

    print("KERNEL_OK")
</pallas_src>

<mosaic_0001>
module attributes {stable_mosaic.version = 11 : i64} {
  func.func @_catcher_kernel(%arg0: i32, %arg1: memref<1x8x128xf32, #tpu.memory_space<vmem>>, %arg2: memref<1x192x128xf32, #tpu.memory_space<vmem>>, %arg3: memref<128x128xf32, #tpu.memory_space<vmem>>, %arg4: memref<128x128xf32, #tpu.memory_space<vmem>>, %arg5: memref<1x8x128xf32, #tpu.memory_space<vmem>>) attributes {dimension_semantics = [#tpu.dimension_semantics<parallel>], iteration_bounds = array<i64: 4>, scalar_prefetch = 0 : i64, scratch_operands = 0 : i64, tpu.core_type = #tpu.core_type<tc>, window_params = [{transform_indices = @transform_0, window_bounds = array<i64: 1, 8, 128>}, {transform_indices = @transform_1, window_bounds = array<i64: 1, 192, 128>}, {pipeline_mode = #tpu.pipeline_mode<synchronous>, transform_indices = @transform_2, window_bounds = array<i64: 128, 128>}, {pipeline_mode = #tpu.pipeline_mode<synchronous>, transform_indices = @transform_3, window_bounds = array<i64: 128, 128>}, {transform_indices = @transform_4, window_bounds = array<i64: 1, 8, 128>}]} {
    %c0 = arith.constant 0 : index
    %c0_0 = arith.constant 0 : index
    %c0_1 = arith.constant 0 : index
    %0 = vector.load %arg1[%c0, %c0_0, %c0_1] : memref<1x8x128xf32, #tpu.memory_space<vmem>>, vector<1x8x128xf32>
    %1 = vector.shape_cast %0 : vector<1x8x128xf32> to vector<8x128xf32>
    %c0_2 = arith.constant 0 : index
    %c0_3 = arith.constant 0 : index
    %c0_4 = arith.constant 0 : index
    %2 = vector.load %arg2[%c0_2, %c0_3, %c0_4] : memref<1x192x128xf32, #tpu.memory_space<vmem>>, vector<1x192x128xf32>
    %3 = vector.shape_cast %2 : vector<1x192x128xf32> to vector<192x128xf32>
    %cst = arith.constant dense<0.000000e+00> : vector<128xf32>
    %4 = vector.multi_reduction <add>, %3, %cst [0] : vector<192x128xf32> to vector<128xf32>
    %5 = vector.shape_cast %4 : vector<128xf32> to vector<1x128xf32>
    %cst_5 = arith.constant 1.920000e+02 : f32
    %6 = vector.broadcast %cst_5 : f32 to vector<1x128xf32>
    %7 = arith.divf %5, %6 : vector<1x128xf32>
    %8 = vector.broadcast %7 : vector<1x128xf32> to vector<8x128xf32>
    %9 = arith.addf %1, %8 : vector<8x128xf32>
    %c0_6 = arith.constant 0 : index
    %c0_7 = arith.constant 0 : index
    %10 = vector.load %arg3[%c0_6, %c0_7] : memref<128x128xf32, #tpu.memory_space<vmem>>, vector<128x128xf32>
    %cst_8 = arith.constant dense<0.000000e+00> : vector<8x128xf32>
    %11 = tpu.matmul %9, %10, %cst_8 {dimension_numbers = #tpu.dot_dimension_numbers<[1], [0], [0], [1], [0, 0, 1, 1], [], []>} : vector<8x128xf32>, vector<128x128xf32>, vector<8x128xf32> -> vector<8x128xf32>
    %12 = vector.shape_cast %3 : vector<192x128xf32> to vector<1x192x128xf32>
    %13 = arith.mulf %12, %12 : vector<1x192x128xf32>
    %cst_9 = arith.constant dense<0.000000e+00> : vector<1x192xf32>
    %14 = vector.multi_reduction <add>, %13, %cst_9 [2] : vector<1x192x128xf32> to vector<1x192xf32>
    %15 = vector.shape_cast %14 : vector<1x192xf32> to vector<1x192x1xf32>
    %cst_10 = arith.constant 1.000000e-24 : f32
    %16 = vector.broadcast %cst_10 : f32 to vector<1x192x1xf32>
    %17 = arith.maximumf %15, %16 : vector<1x192x1xf32>
    %18 = math.rsqrt %17 : vector<1x192x1xf32>
    %19 = vector.broadcast %18 : vector<1x192x1xf32> to vector<1x192x128xf32>
    %20 = arith.mulf %12, %19 : vector<1x192x128xf32>
    "tpu.trace_start"() <{level = 10 : i32, message = "gik,gjk->gij"}> : () -> ()
    %cst_11 = arith.constant dense<0.000000e+00> : vector<1x192x192xf32>
    %21 = tpu.matmul %20, %20, %cst_11 {dimension_numbers = #tpu.dot_dimension_numbers<[2], [2], [1], [1], [0, 0, 0, 1, 1, 1], [0], [0]>} : vector<1x192x128xf32>, vector<1x192x128xf32>, vector<1x192x192xf32> -> vector<1x192x192xf32>
    "tpu.trace_stop"() : () -> ()
    %cst_12 = arith.constant 0.0220970865 : f32
    %22 = vector.broadcast %cst_12 : f32 to vector<1x192x192xf32>
    %23 = arith.mulf %21, %22 : vector<1x192x192xf32>
    %cst_13 = arith.constant dense<0xFF800000> : vector<1x192xf32>
    %24 = vector.multi_reduction <maximumf>, %23, %cst_13 [2] : vector<1x192x192xf32> to vector<1x192xf32>
    %25 = vector.shape_cast %24 : vector<1x192xf32> to vector<1x192x1xf32>
    %26 = vector.broadcast %25 : vector<1x192x1xf32> to vector<1x192x192xf32>
    %27 = arith.subf %23, %26 : vector<1x192x192xf32>
    %28 = math.exp %27 : vector<1x192x192xf32>
    %cst_14 = arith.constant dense<0.000000e+00> : vector<1x192xf32>
    %29 = vector.multi_reduction <add>, %28, %cst_14 [2] : vector<1x192x192xf32> to vector<1x192xf32>
    %30 = vector.shape_cast %29 : vector<1x192xf32> to vector<1x192x1xf32>
    %31 = tpu.reciprocal %30 {approx = true} : vector<1x192x1xf32> -> vector<1x192x1xf32>
    %32 = vector.broadcast %31 : vector<1x192x1xf32> to vector<1x192x192xf32>
    %33 = arith.mulf %28, %32 : vector<1x192x192xf32>
    "tpu.trace_start"() <{level = 10 : i32, message = "gij,gjk->gik"}> : () -> ()
    %cst_15 = arith.constant dense<0.000000e+00> : vector<1x192x128xf32>
    %34 = tpu.matmul %33, %12, %cst_15 {dimension_numbers = #tpu.dot_dimension_numbers<[2], [1], [1], [2], [0, 0, 0, 1, 1, 2], [0], [0]>} : vector<1x192x192xf32>, vector<1x192x128xf32>, vector<1x192x128xf32> -> vector<1x192x128xf32>
    "tpu.trace_stop"() : () -> ()
    %35 = vector.shape_cast %34 : vector<1x192x128xf32> to vector<192x128xf32>
    %c0_16 = arith.constant 0 : index
    %c0_17 = arith.constant 0 : index
    %36 = vector.load %arg4[%c0_16, %c0_17] : memref<128x128xf32, #tpu.memory_space<vmem>>, vector<128x128xf32>
    %cst_18 = arith.constant dense<0.000000e+00> : vector<192x128xf32>
    %37 = tpu.matmul %35, %36, %cst_18 {dimension_numbers = #tpu.dot_dimension_numbers<[1], [0], [0], [1], [0, 0, 1, 1], [], []>} : vector<192x128xf32>, vector<128x128xf32>, vector<192x128xf32> -> vector<192x128xf32>
    %cst_19 = arith.constant dense<0.000000e+00> : vector<8x192xf32>
    %38 = tpu.matmul %11, %37, %cst_19 {dimension_numbers = #tpu.dot_dimension_numbers<[1], [1], [0], [0], [0, 0, 1, 0], [], []>} : vector<8x128xf32>, vector<192x128xf32>, vector<8x192xf32> -> vector<8x192xf32>
    %cst_20 = arith.constant 0.0220970865 : f32
    %39 = vector.broadcast %cst_20 : f32 to vector<8x192xf32>
    %40 = arith.mulf %38, %39 : vector<8x192xf32>
    %cst_21 = arith.constant dense<0xFF800000> : vector<8xf32>
    %41 = vector.multi_reduction <maximumf>, %40, %cst_21 [1] : vector<8x192xf32> to vector<8xf32>
    %42 = vector.shape_cast %41 : vector<8xf32> to vector<8x1xf32>
    %43 = vector.broadcast %42 : vector<8x1xf32> to vector<8x192xf32>
    %44 = arith.subf %40, %43 : vector<8x192xf32>
    %45 = math.exp %44 : vector<8x192xf32>
    %cst_22 = arith.constant dense<0.000000e+00> : vector<8xf32>
    %46 = vector.multi_reduction <add>, %45, %cst_22 [1] : vector<8x192xf32> to vector<8xf32>
    %47 = vector.shape_cast %46 : vector<8xf32> to vector<8x1xf32>
    %48 = tpu.reciprocal %47 {approx = true} : vector<8x1xf32> -> vector<8x1xf32>
    %49 = vector.broadcast %48 : vector<8x1xf32> to vector<8x192xf32>
    %50 = arith.mulf %45, %49 : vector<8x192xf32>
    %cst_23 = arith.constant dense<0.000000e+00> : vector<8x128xf32>
    %51 = tpu.matmul %50, %35, %cst_23 {dimension_numbers = #tpu.dot_dimension_numbers<[1], [0], [0], [1], [0, 0, 1, 1], [], []>} : vector<8x192xf32>, vector<192x128xf32>, vector<8x128xf32> -> vector<8x128xf32>
    %c0_24 = arith.constant 0 : index
    %c0_25 = arith.constant 0 : index
    %c0_26 = arith.constant 0 : index
    %52 = vector.load %arg5[%c0_24, %c0_25, %c0_26] : memref<1x8x128xf32, #tpu.memory_space<vmem>>, vector<1x8x128xf32>
    %53 = vector.shape_cast %52 : vector<1x8x128xf32> to vector<8x128xf32>
    %54 = vector.shape_cast %51 : vector<8x128xf32> to vector<1x8x128xf32>
    tpu.vector_store %arg5[%c0_24, %c0_25, %c0_26], %54 {strides = array<i32>} : memref<1x8x128xf32, #tpu.memory_space<vmem>>, vector<1x8x128xf32>,
    return
  }
  func.func @transform_0(%arg0: i32) -> (i32, i32, i32) {
    %c0_i32 = arith.constant 0 : i32
    %c0_i32_0 = arith.constant 0 : i32
    %c0_i32_1 = arith.constant 0 : i32
    return %arg0, %c0_i32, %c0_i32_0 : i32, i32, i32
  }
  func.func @transform_1(%arg0: i32) -> (i32, i32, i32) {
    %c0_i32 = arith.constant 0 : i32
    %c0_i32_0 = arith.constant 0 : i32
    %c0_i32_1 = arith.constant 0 : i32
    return %arg0, %c0_i32, %c0_i32_0 : i32, i32, i32
  }
  func.func @transform_2(%arg0: i32) -> (i32, i32) {
    %c0_i32 = arith.constant 0 : i32
    %c0_i32_0 = arith.constant 0 : i32
    %c0_i32_1 = arith.constant 0 : i32
    return %c0_i32, %c0_i32_0 : i32, i32
  }
  func.func @transform_3(%arg0: i32) -> (i32, i32) {
    %c0_i32 = arith.constant 0 : i32
    %c0_i32_0 = arith.constant 0 : i32
    %c0_i32_1 = arith.constant 0 : i32
    return %c0_i32, %c0_i32_0 : i32, i32
  }
  func.func @transform_4(%arg0: i32) -> (i32, i32, i32) {
    %c0_i32 = arith.constant 0 : i32
    %c0_i32_0 = arith.constant 0 : i32
    %c0_i32_1 = arith.constant 0 : i32
    return %arg0, %c0_i32, %c0_i32_0 : i32, i32, i32
  }
}

</mosaic_0001>

<bundles_post_ra>
// kernel: tpu_custom_call.1
= control target key start
LH: loop header
LB: loop body
LE: loop exit
PB: predicated region body
PF: predicated region fallthrough
CT: control target
= control target key end

     0   :  { %9 = vsyncpa [#allocation3], 0  ;;  %s4018_s0 = inlined_call_operand.hbm [shape: f32[4,8,128], index: 0, kind: input, shape index: {}]   ;;  %s4019_s1 = inlined_call_operand.hbm [shape: f32[4,192,128], index: 1, kind: input, shape index: {}]   ;;  %s4020_s2 = inlined_call_operand.hbm [shape: f32[128,128], index: 2, kind: input, shape index: {}]   ;;  %s4021_s3 = inlined_call_operand.hbm [shape: f32[128,128], index: 3, kind: input, shape index: {}]   ;;  %s4022_s4 = inlined_call_operand.hbm [shape: f32[4,8,128], index: 4, kind: output, shape index: {}]  }
   0x1   :  { %11 = vsyncpa [#allocation3 + $0x1], 0 }
   0x2   :  { %12 = vsyncpa [#allocation6], 0 }
   0x3   :  { %14 = vsyncpa [#allocation6 + $0x1], 0 }
   0x4   :  { %15 = vsyncpa [#allocation9], 0 }
   0x5   :  { %16 = vsyncpa [#allocation4], 0 }
   0x6   :  { %18 = vsyncpa [#allocation4 + $0x1], 0  ;;  %s2918_s15 = smov 0   ;;  %s2920_s16 = smov 0  }
   0x7   :  { %s2922_s17 = smov 0   ;;  %s2924_s18 = smov 0  }
   0x8 LB: > { %s2939_s19 = sadd.s32 4294967295, %s2881_s18   ;;  %s1983_s20 = sadd.s32 4294967294, %s2881_s18   ;;  %s2881_s18 = sphi %s2924_s18, %s4070_s18   ;;  %s2877_s17 = sphi %s2922_s17, %s4069_s17   ;;  %s2873_s16 = sphi %s2920_s16, %s4068_s16   ;;  %s2869_s15 = sphi %s2918_s15, %s4067_s15  }
   0x9   : > { %p44_p0 = scmp.ne.s32.totalorder %s2873_s16, %s2869_s15  ;;  %p4023_p1 = scmp.eq.s32.totalorder %s2939_s19, 0 }
   0xa   : > { %p142_p3 = scmp.eq.s32.totalorder %s1983_s20, 3  ;;  %p1984_p5 = scmp.ge.s32.totalorder %s2881_s18, 1 }
   0xb   : > { %p2948_p4 = por %p4023_p1, %p44_p0  ;;  %p149_p7 = scmp.lt.s32.totalorder %s2881_s18, 5 }
   0xc   : > { %p2953_p6 = por %p142_p3, %p44_p0  ;;  %s2883_s24 = smov [#allocation7]  }
   0xd   : > { %s4037_s21 = scalar_select %p2948_p4, 1, 0 }
   0xe   : > { %s4038_s22 = scalar_select %p2953_p6, 1, 0 }
   0xf   : > { %p2958_p8 = pnand %p1984_p5, %p149_p7  ;;  %s161_s25 = sshll.u32 %s2883_s24, 4  ;;  %s162_s25 = int_to_ptr.vmem [resolvable:$true] %s161_s25 }
  0x10   : > { %s2884_s27 = smov [#allocation8]   ;;  %s2687_s5 = scalar_lea.hbm %s4020_s2, 2048 }
  0x11   : > { %s4039_s23 = scalar_select %p2958_p8, 1, 0 }
  0x12   : > { %p2402_p9 = pneg %p2958_p8  ;;  %s174_s28 = sshll.u32 %s2884_s27, 4  ;;  %s2970_s28 = int_to_ptr.vmem [resolvable:$true] %s174_s28 }
  0x13   : > { %p2688_p11 = scmp.ne.s32.totalorder %s4020_s2, %s2687_s5  ;;  %p2694_p3 = scmp.lt.u32.totalorder %s2687_s5, %s4020_s2 }
  0x14   : > { %p2966_p10 = pnand %p2402_p9, %p4023_p1 }
  0x16   : > { %p2689_p12 = pneg %p2966_p10 }
  0x18   : > { %p2690_p13 = pnand %p2689_p12, %p2688_p11 }
  0x1a   : > { %p2691_p0 = pneg %p2690_p13 }
  0x1c   : > { %p2696_p5 = pnand %p2694_p3, %p2691_p0 }
  0x1e   : > { %2699 = shalt.err (!%p2696_p5)
}
  0x1f   : > { %s2700_s10 = scalar_lea.vmem %s162_s25, 2048  ;;  %p2708_p2 = scmp.lt.s32.totalorder %s162_s25, %s162_s25 }
  0x20   : > { %p2701_p7 = scmp.ne.s32.totalorder %s162_s25, %s2700_s10  ;;  %p2709_p6 = scmp.lt.s32.totalorder %s2700_s10, %s2700_s10 }
  0x22   : > { %p2703_p9 = pnand %p2701_p7, %p2689_p12  ;;  %p2710_p4 = por %p2709_p6, %p2708_p2 }
  0x24   : > { %p2704_p1 = pneg %p2703_p9 }
  0x26   : > { %p2711_p8 = pnand %p2710_p4, %p2704_p1 }
  0x28   : > { %2714 = shalt.err (!%p2711_p8)
}
  0x29   : > { %s4026_s11 = smov 128   ;;  %s4027_s12 = smov 8  }
  0x2a   : > { %2405 = dma.hbm_to_vmem [thread:$0]  (!%p2966_p10), %s4020_s2, 2048, %s162_s25, [#allocation6], %s4026_s11, %s4026_s11, %s4027_s12  }
  0x2b   : > { %s2715_s27 = scalar_lea.hbm %s4021_s3, 2048 }
  0x2c   : > { %p2716_p1 = scmp.ne.s32.totalorder %s4021_s3, %s2715_s27  ;;  %p2722_p6 = scmp.lt.u32.totalorder %s2715_s27, %s4021_s3 }
  0x2e   : > { %p2718_p2 = pnand %p2716_p1, %p2689_p12 }
  0x30   : > { %p2719_p4 = pneg %p2718_p2 }
  0x32   : > { %p2724_p8 = pnand %p2722_p6, %p2719_p4 }
  0x34   : > { %2727 = shalt.err (!%p2724_p8)
}
  0x35   : > { %s2728_s25 = scalar_lea.vmem %s2970_s28, 2048  ;;  %p2736_p3 = scmp.lt.s32.totalorder %s2970_s28, %s2970_s28 }
  0x36   : > { %p2729_p11 = scmp.ne.s32.totalorder %s2970_s28, %s2728_s25  ;;  %p2737_p5 = scmp.lt.s32.totalorder %s2728_s25, %s2728_s25 }
  0x38   : > { %p2731_p13 = pnand %p2729_p11, %p2689_p12  ;;  %p2738_p7 = por %p2737_p5, %p2736_p3 }
  0x3a   : > { %p2732_p0 = pneg %p2731_p13 }
  0x3c   : > { %p2739_p9 = pnand %p2738_p7, %p2732_p0 }
  0x3e   : > { %2742 = shalt.err (!%p2739_p9)
}
  0x3f   : > { %2408 = dma.hbm_to_vmem [thread:$0]  (!%p2966_p10), %s4021_s3, 2048, %s2970_s28, [#allocation9], %s4026_s11, %s4026_s11, %s4027_s12  }
  0x40   : > { %s3026_s26 = sadd.s32 1, %s2881_s18   ;;  %s31_s9 = sadd.s32 1, %s2877_s17 }
  0x41   : > { %s28_s10 = ssub.s32 %s2881_s18, %s3026_s26  ;;  %p38_p12 = scmp.ne.s32.totalorder %s2877_s17, %s2873_s16 }
  0x42   : > { %p29_p1 = scmp.eq.s32.totalorder %s28_s10, 0  ;;  %p39_p2 = scmp.eq.s32.totalorder %s2881_s18, 0 }
  0x43   : > { %p4041_p4 = scmp.eq.s32.totalorder %s2939_s19, 3  ;;  %p2422_p8 = scmp.lt.s32.totalorder %s2881_s18, 4 }
  0x44   : > { %s3042_s14 = scalar_select %p29_p1, %s2877_s17, %s31_s9  }
  0x45   : > { %p3036_p6 = por %p4041_p4, %p38_p12  ;;  %p40_p11 = por %p39_p2, %p38_p12 }
  0x46   : > { %s3045_s20 = sand.u32 1, %s2877_s17   ;;  %s1989_s24 = sshll.u32 %s2881_s18, 7 }
  0x47   : > { %s1988_s28 = sshll.u32 %s3045_s20, 3  ;;  %s3052_s30 = scalar_lea.hbm %s4018_s0, %s1989_s24 }
  0x48   : > { %s192_s5 = scalar_lea.vmem [#allocation2], %s1988_s28  ;;  %p3056_p10 = pnand %p2422_p8, %p40_p11 }
  0x49   : > { %s199_s6 = sshll.u32 %s192_s5, 4  ;;  %s2385_s7 = smul.u32 192, %s3045_s20  ;;  %s3054_s6 = int_to_ptr.vmem [resolvable:$true] %s199_s6 }
  0x4a   : > { %s206_s8 = sand.u32 1, %s2881_s18   ;;  %s189_s9 = scalar_lea.sflag [#allocation3], %s3045_s20 }
  0x4b   : > { %s2743_s10 = scalar_lea.hbm %s3052_s30, 128  ;;  %p2745_p0 = pneg %p3056_p10 }
  0x4c   : > { %p2744_p13 = scmp.ne.s32.totalorder %s3052_s30, %s2743_s10  ;;  %s2748_s27 = scalar_lea.hbm %s4018_s0, 512 }
  0x4d   : > { %p2749_p7 = scmp.lt.u32.totalorder %s3052_s30, %s4018_s0  ;;  %p2750_p9 = scmp.lt.u32.totalorder %s2748_s27, %s2743_s10 }
  0x4e   : > { %p2746_p3 = pnand %p2745_p0, %p2744_p13  ;;  %p2752_p1 = scmp.lt.u32.totalorder %s2743_s10, %s3052_s30 }
  0x4f   : > { %p2751_p12 = por %p2750_p9, %p2749_p7 }
  0x50   : > { %p2747_p5 = pneg %p2746_p3 }
  0x51   : > { %p2753_p2 = por %p2752_p1, %p2751_p12 }
  0x53   : > { %p2754_p4 = pnand %p2753_p2, %p2747_p5 }
  0x55   : > { %2757 = shalt.err (!%p2754_p4)
}
  0x56   : > { %s2758_s11 = scalar_lea.vmem %s3054_s6, 128  ;;  %s2887_s28 = smov [#allocation2]  }
  0x57   : > { %p2759_p8 = scmp.ne.s32.totalorder %s3054_s6, %s2758_s11  ;;  %s2763_s24 = sshll.u32 %s2887_s28, 4  ;;  %s2764_s24 = int_to_ptr.vmem [resolvable:$false] %s2763_s24 }
  0x58   : > { %s2765_s29 = scalar_lea.vmem %s2764_s24, 256  ;;  %p2766_p3 = scmp.lt.s32.totalorder %s3054_s6, %s2764_s24 }
  0x59   : > { %p2761_p11 = pnand %p2759_p8, %p2745_p0  ;;  %p2767_p7 = scmp.lt.s32.totalorder %s2765_s29, %s2758_s11 }
  0x5b   : > { %p2762_p13 = pneg %p2761_p11  ;;  %p2768_p9 = por %p2767_p7, %p2766_p3 }
  0x5d   : > { %p2769_p12 = pnand %p2768_p9, %p2762_p13 }
  0x5f   : > { %2772 = shalt.err (!%p2769_p12)
}
  0x60   : > { %2412 = dma.hbm_to_vmem [thread:$0]  (!%p3056_p10), %s3052_s30, 128, %s3054_s6, %s189_s9  }
  0x61   : > { %s2386_s10 = smul.u32 3072, %s2881_s18  ;;  %s210_s27 = scalar_lea.vmem [#allocation5], %s2385_s7 }
  0x62   : > { %s217_s5 = sshll.u32 %s210_s27, 4  ;;  %s3100_s29 = scalar_lea.sflag [#allocation6], %s206_s8  ;;  %s3091_s5 = int_to_ptr.vmem [resolvable:$true] %s217_s5 }
  0x63   : > { %s3096_s24 = scalar_lea.hbm %s4019_s1, %s2386_s10  ;;  %s2778_s6 = scalar_lea.hbm %s4019_s1, 12288 }
  0x64   : > { %s2773_s12 = scalar_lea.hbm %s3096_s24, 3072  ;;  %p2779_p4 = scmp.lt.u32.totalorder %s3096_s24, %s4019_s1 }
  0x65   : > { %p2774_p5 = scmp.ne.s32.totalorder %s3096_s24, %s2773_s12  ;;  %p2780_p8 = scmp.lt.u32.totalorder %s2778_s6, %s2773_s12 }
  0x66   : > { %p2782_p13 = scmp.lt.u32.totalorder %s2773_s12, %s3096_s24 }
  0x67   : > { %p2776_p1 = pnand %p2774_p5, %p2745_p0  ;;  %p2781_p11 = por %p2780_p8, %p2779_p4 }
  0x69   : > { %p2777_p2 = pneg %p2776_p1  ;;  %p2783_p3 = por %p2782_p13, %p2781_p11 }
  0x6b   : > { %p2784_p7 = pnand %p2783_p3, %p2777_p2 }
  0x6d   : > { %2787 = shalt.err (!%p2784_p7)
}
  0x6e   : > { %s2788_s8 = scalar_lea.vmem %s3091_s5, 3072  ;;  %s2888_s10 = smov [#allocation5]  }
  0x6f   : > { %p2789_p9 = scmp.ne.s32.totalorder %s3091_s5, %s2788_s8  ;;  %s2793_s27 = sshll.u32 %s2888_s10, 4  ;;  %s2794_s27 = int_to_ptr.vmem [resolvable:$false] %s2793_s27 }
  0x70   : > { %s2795_s28 = scalar_lea.vmem %s2794_s27, 6144  ;;  %p2796_p1 = scmp.lt.s32.totalorder %s3091_s5, %s2794_s27 }
  0x71   : > { %p2791_p12 = pnand %p2789_p9, %p2745_p0  ;;  %p2797_p4 = scmp.lt.s32.totalorder %s2795_s28, %s2788_s8 }
  0x73   : > { %p2792_p5 = pneg %p2791_p12  ;;  %p2798_p8 = por %p2797_p4, %p2796_p1 }
  0x75   : > { %p2799_p11 = pnand %p2798_p8, %p2792_p5 }
  0x77   : > { %2802 = shalt.err (!%p2799_p11)
}
  0x78   : > { %s4044_s12 = smov 8   ;;  %s4045_s11 = smov 128  }
  0x79   : > { %2415 = dma.hbm_to_vmem [thread:$0]  (!%p3056_p10), %s3096_s24, 3072, %s3091_s5, %s3100_s29, %s4045_s11, %s4045_s11, %s4044_s12  }
  0x7a   : > { %p4046_p0 = scmp.ne.s32.totalorder %s4039_s23, 0 }
  0x7c   : > { %229 = sbr.rel (%p4046_p0) target bundleno = 2228 (0x8b4), region = 36 }
  0x83   : > { %s3132_s20 = sand.u32 1, %s2873_s16   ;;  %p4047_p2 = scmp.ne.s32.totalorder %s4037_s21, 0 }
  0x84   : > { %s1992_s30 = sshll.u32 %s3132_s20, 3  ;;  %s232_s6 = scalar_lea.sflag [#allocation3], %s3132_s20 }
  0x85   : > { %s3138_s25 = scalar_lea.vmem [#allocation2], %s1992_s30 }
  0x86   : > { %2848 = dma.done.wait (%p4047_p2), %s232_s6, 128  }
  0x87   : > { %2850 = vsyncadd (%p4047_p2), %s232_s6, 4294967168  ;;  %s240_s23 = sand.u32 1, %s2939_s19   ;;  %s2387_s5 = smul.u32 192, %s3132_s20 }
  0x88   : > { %s241_s24 = scalar_lea.sflag [#allocation6], %s240_s23 }
  0x89   : > { %s3146_s29 = scalar_lea.vmem [#allocation5], %s2387_s5 }
  0x8a   : > { %2852 = dma.done.wait (%p4047_p2), %s241_s24, 3072  }
  0x8b   : > { %2854 = vsyncadd (%p4047_p2), %s241_s24, 4294964224  ;;  %p4048_p10 = scmp.eq.s32.totalorder %s2939_s19, 0 }
  0x8d   : > { %2856 = dma.done.wait (%p4048_p10), [#allocation6], 2048   ;;  %p4049_p13 = pmov %p4048_p10 }
  0x8e   : > { %p4050_p3 = pmov %p4048_p10 }
  0x8f   : > { %2858 = vsyncadd (%p4049_p13), [#allocation6], 4294965248 }
  0x90   : > { %2860 = dma.done.wait (%p4050_p3), [#allocation9], 2048   ;;  %p4051_p7 = pmov %p4050_p3 }
  0x91   : > { %v3161_v0 = vld [vmem:[%s3146_s29] sm:$0xff]  ;;  %v3164_v1 = vld [vmem:[%s3146_s29 + $0x10] sm:$0xff]  ;;  %v3167_v2 = vld [vmem:[%s3146_s29 + $0x8] sm:$0xff]  ;;  %v4029_v34 = vmov 0.0|0.0   ;;  %v4028_v49 = vmov 0.0   ;;  %vm826_vm0 = vcmask 523264  }
  0x92   : > { %2862 = vsyncadd (%p4051_p7), [#allocation9], 4294965248  ;;  %v425_v3 = vmul.f32 %v3161_v0, %v3161_v0  ;;  %v427_v4 = vmul.f32 %v3164_v1, %v3164_v1  ;;  %v3174_v5 = vld [vmem:[%s3146_s29 + $0x18] sm:$0xff]  ;;  %v426_v6 = vmul.f32 %v3167_v2, %v3167_v2  ;;  %v3181_v8 = vld [vmem:[%s3146_s29 + $0x28] sm:$0xff]  ;;  %2209 = vmatprep.subr.bf16.mxu1 %v4029_v34  ;;  %2185 = vmatprep.subr.bf16.mxu0 %v4029_v34  ;;  %vm2891_vm1 = vmmov 0   ;;  %s281_s21 = scalar_lea.vmem [#allocation10], %s1992_s30 }
  0x93   : > { %v428_v7 = vmul.f32 %v3174_v5, %v3174_v5  ;;  %v3184_v9 = vld [vmem:[%s3146_s29 + $0x20] sm:$0xff]  ;;  %v430_v10 = vmul.f32 %v3181_v8, %v3181_v8  ;;  %v3191_v12 = vld [vmem:[%s3146_s29 + $0x38] sm:$0xff]  ;;  %v3194_v13 = vld [vmem:[%s3146_s29 + $0x30] sm:$0xff]  ;;  %633 = vmatprep.mubr.f32.mxu1 %v4028_v49  ;;  %s1871_s7 = sshll.u32 %s281_s21, 4  ;;  %s2022_s9 = sshll.u32 %s2939_s19, 7  ;;  %s3972_s7 = int_to_ptr.vmem [resolvable:$true] %s1871_s7 }
  0x94   : > { %449 = vadd.xlane.f32.xlu0 %v425_v3  ;;  %453 = vadd.xlane.f32.xlu1 %v427_v4  ;;  %v429_v11 = vmul.f32 %v3184_v9, %v3184_v9  ;;  %v432_v14 = vmul.f32 %v3191_v12, %v3191_v12  ;;  %v431_v15 = vmul.f32 %v3194_v13, %v3194_v13  ;;  %v3201_v16 = vld [vmem:[%s3146_s29 + $0x48] sm:$0xff]  ;;  %v3204_v17 = vld [vmem:[%s3146_s29 + $0x40] sm:$0xff]  ;;  %v3211_v20 = vld [vmem:[%s3146_s29 + $0x58] sm:$0xff]  ;;  %s3977_s27 = scalar_lea.hbm %s4022_s4, %s2022_s9  ;;  %s1858_s28 = scalar_lea.sflag [#allocation4], %s3132_s20 }
  0x95   : > { %v434_v18 = vmul.f32 %v3201_v16, %v3201_v16  ;;  %v433_v19 = vmul.f32 %v3204_v17, %v3204_v17  ;;  %v3214_v21 = vld [vmem:[%s3146_s29 + $0x50] sm:$0xff]  ;;  %v436_v22 = vmul.f32 %v3211_v20, %v3211_v20  ;;  %v3221_v24 = vld [vmem:[%s3146_s29 + $0x68] sm:$0xff]  ;;  %v3224_v25 = vld [vmem:[%s3146_s29 + $0x60] sm:$0xff]  ;;  %s2803_s12 = scalar_lea.vmem %s3972_s7, 128  ;;  %s2892_s19 = smov [#allocation10]  }
  0x96   : > { %v435_v23 = vmul.f32 %v3214_v21, %v3214_v21  ;;  %v438_v26 = vmul.f32 %v3221_v24, %v3221_v24  ;;  %v437_v27 = vmul.f32 %v3224_v25, %v3224_v25  ;;  %v3231_v28 = vld [vmem:[%s3146_s29 + $0x78] sm:$0xff]  ;;  %v3234_v29 = vld [vmem:[%s3146_s29 + $0x70] sm:$0xff]  ;;  %v3241_v32 = vld [vmem:[%s3146_s29 + $0x88] sm:$0xff]  ;;  %p2804_p9 = scmp.ne.s32.totalorder %s3972_s7, %s2803_s12  ;;  %s2807_s11 = sshll.u32 %s2892_s19, 4  ;;  %s2808_s11 = int_to_ptr.vmem [resolvable:$false] %s2807_s11 }
  0x97   : > { %v440_v30 = vmul.f32 %v3231_v28, %v3231_v28  ;;  %v439_v31 = vmul.f32 %v3234_v29, %v3234_v29  ;;  %v3244_v33 = vld [vmem:[%s3146_s29 + $0x80] sm:$0xff]  ;;  %v442_v35 = vmul.f32 %v3241_v32, %v3241_v32  ;;  %v3253_v37 = vld [vmem:[%s3146_s29 + $0x98] sm:$0xff]  ;;  %v3256_v38 = vld [vmem:[%s3146_s29 + $0x90] sm:$0xff]  ;;  %s2809_s30 = scalar_lea.vmem %s2808_s11, 256  ;;  %p2810_p1 = scmp.lt.s32.totalorder %s3972_s7, %s2808_s11 }
  0x98   : > { %451 = vadd.xlane.f32.xlu0 %v426_v6  ;;  %455 = vadd.xlane.f32.xlu1 %v428_v7  ;;  %v441_v36 = vmul.f32 %v3244_v33, %v3244_v33  ;;  %v444_v39 = vmul.f32 %v3253_v37, %v3253_v37  ;;  %v443_v40 = vmul.f32 %v3256_v38, %v3256_v38  ;;  %v3263_v41 = vld [vmem:[%s3146_s29 + $0xa8] sm:$0xff]  ;;  %v3266_v42 = vld [vmem:[%s3146_s29 + $0xa0] sm:$0xff]  ;;  %v3273_v45 = vld [vmem:[%s3146_s29 + $0xb8] sm:$0xff]  ;;  %p2805_p12 = pnand %p2804_p9, %p3036_p6  ;;  %p2811_p4 = scmp.lt.s32.totalorder %s2809_s30, %s2803_s12 }
  0x99   : > { %v446_v43 = vmul.f32 %v3263_v41, %v3263_v41  ;;  %v445_v44 = vmul.f32 %v3266_v42, %v3266_v42  ;;  %v3276_v46 = vld [vmem:[%s3146_s29 + $0xb0] sm:$0xff]  ;;  %v448_v47 = vmul.f32 %v3273_v45, %v3273_v45 }
  0x9a   : > { %v447_v48 = vmul.f32 %v3276_v46, %v3276_v46  ;;  %p2806_p5 = pneg %p2805_p12  ;;  %p2812_p8 = por %p2811_p4, %p2810_p1 }
  0x9c   : > { %459 = vadd.xlane.f32.xlu1 %v430_v10  ;;  %457 = vadd.xlane.f32.xlu0 %v429_v11  ;;  %p2813_p11 = pnand %p2812_p8, %p2806_p5 }
  0xa0   : > { %463 = vadd.xlane.f32.xlu1 %v432_v14  ;;  %461 = vadd.xlane.f32.xlu0 %v431_v15 }
  0xa4   : > { %467 = vadd.xlane.f32.xlu1 %v434_v18  ;;  %465 = vadd.xlane.f32.xlu0 %v433_v19 }
  0xa8   : > { %471 = vadd.xlane.f32.xlu1 %v436_v22  ;;  %469 = vadd.xlane.f32.xlu0 %v435_v23 }
  0xac   : > { %475 = vadd.xlane.f32.xlu1 %v438_v26  ;;  %473 = vadd.xlane.f32.xlu0 %v437_v27 }
  0xb0   : > { %479 = vadd.xlane.f32.xlu1 %v440_v30  ;;  %477 = vadd.xlane.f32.xlu0 %v439_v31 }
  0xb4   : > { %483 = vadd.xlane.f32.xlu1 %v442_v35  ;;  %481 = vadd.xlane.f32.xlu0 %v441_v36 }
  0xb8   : > { %487 = vadd.xlane.f32.xlu1 %v444_v39  ;;  %485 = vadd.xlane.f32.xlu0 %v443_v40 }
  0xbc   : > { %491 = vadd.xlane.f32.xlu1 %v446_v43  ;;  %489 = vadd.xlane.f32.xlu0 %v445_v44 }
  0xc0   : > { %495 = vadd.xlane.f32.xlu1 %v448_v47  ;;  %493 = vadd.xlane.f32.xlu0 %v447_v48 }
 0x121   : > { %v450_v50 = vpop.xlane.xlu0 %449  ;;  %v454_v51 = vpop.xlane.xlu1 %453 }
 0x122   : > { %v497_v52 = vmax.f32 %v450_v50, 1e-24  ;;  %v499_v56 = vmax.f32 %v454_v51, 1e-24 }
 0x124   : > { %2465 = vrsqrt.f32 %v497_v52 }
 0x125   : > { %v452_v53 = vpop.xlane.xlu0 %451  ;;  %v456_v54 = vpop.xlane.xlu1 %455 }
 0x126   : > { %v498_v55 = vmax.f32 %v452_v53, 1e-24  ;;  %v500_v57 = vmax.f32 %v456_v54, 1e-24 }
 0x128   : > { %2467 = vrsqrt.f32 %v498_v55 }
 0x129   : > { %v460_v58 = vpop.xlane.xlu1 %459  ;;  %2469 = vrsqrt.f32 %v499_v56  ;;  %v458_v59 = vpop.xlane.xlu0 %457 }
 0x12a   : > { %2471 = vrsqrt.f32 %v500_v57  ;;  %v502_v60 = vmax.f32 %v460_v58, 1e-24  ;;  %v501_v61 = vmax.f32 %v458_v59, 1e-24 }
 0x12c   : > { %2473 = vrsqrt.f32 %v502_v60 }
 0x12d   : > { %2475 = vrsqrt.f32 %v501_v61  ;;  %v464_v3 = vpop.xlane.xlu1 %463  ;;  %v462_v7 = vpop.xlane.xlu0 %461 }
 0x12e   : > { %v2466_v62 = vpop.eup %2465  ;;  %v504_v14 = vmax.f32 %v464_v3, 1e-24  ;;  %v503_v18 = vmax.f32 %v462_v7, 1e-24 }
 0x12f   : > { %v3284_v4 = vmul.f32 %v2466_v62, %v3161_v0 }
 0x130   : > { %2477 = vrsqrt.f32 %v504_v14 }
 0x131   : > { %2479 = vrsqrt.f32 %v503_v18  ;;  %v468_v23 = vpop.xlane.xlu1 %467  ;;  %v466_v27 = vpop.xlane.xlu0 %465 }
 0x132   : > { %v2468_v63 = vpop.eup %2467  ;;  %v506_v35 = vmax.f32 %v468_v23, 1e-24  ;;  %v505_v36 = vmax.f32 %v466_v27, 1e-24 }
 0x133   : > { %v3287_v6 = vmul.f32 %v2468_v63, %v3167_v2  ;;  %v2470_v10 = vpop.eup %2469 }
 0x134   : > { %v2472_v15 = vpop.eup %2471  ;;  %v3293_v19 = vmul.f32 %v2470_v10, %v3164_v1  ;;  %2481 = vrsqrt.f32 %v506_v35 }
 0x135   : > { %v2210_v11 = vpack.c.bf16 %v3287_v6, %v3284_v4  ;;  %v3296_v22 = vmul.f32 %v2472_v15, %v3174_v5  ;;  %2483 = vrsqrt.f32 %v505_v36  ;;  %v472_v43 = vpop.xlane.xlu1 %471  ;;  %v470_v48 = vpop.xlane.xlu0 %469 }
 0x136   : > { %v2474_v26 = vpop.eup %2473  ;;  %v508_v51 = vmax.f32 %v472_v43, 1e-24  ;;  %v507_v52 = vmax.f32 %v470_v48, 1e-24 }
 0x137   : > { %2211 = vmatpush1.bf16.xpose.msra.mxu1 %v2210_v11  ;;  %v2476_v30 = vpop.eup %2475  ;;  %v2213_v31 = vpack.c.bf16 %v3296_v22, %v3293_v19  ;;  %v3304_v40 = vmul.f32 %v2474_v26, %v3181_v8 }
 0x138   : > { %2212 = vmatprep.subr.bf16.mxu1 %v4029_v34  ;;  %v3301_v39 = vmul.f32 %v2476_v30, %v3184_v9  ;;  %2485 = vrsqrt.f32 %v508_v51 }
 0x139   : > { %2487 = vrsqrt.f32 %v507_v52  ;;  %v476_v55 = vpop.xlane.xlu1 %475  ;;  %v474_v58 = vpop.xlane.xlu0 %473 }
 0x13a   : > { %v2478_v44 = vpop.eup %2477  ;;  %v2216_v47 = vpack.c.bf16 %v3304_v40, %v3301_v39  ;;  %v510_v60 = vmax.f32 %v476_v55, 1e-24  ;;  %v509_v61 = vmax.f32 %v474_v58, 1e-24 }
 0x13b   : > { %v2480_v50 = vpop.eup %2479  ;;  %v3313_v54 = vmul.f32 %v2478_v44, %v3191_v12 }
 0x13c   : > { %v3310_v53 = vmul.f32 %v2480_v50, %v3194_v13  ;;  %2489 = vrsqrt.f32 %v510_v60 }
 0x13d   : > { %2491 = vrsqrt.f32 %v509_v61  ;;  %v480_v3 = vpop.xlane.xlu1 %479  ;;  %v478_v11 = vpop.xlane.xlu0 %477 }
 0x13e   : > { %v2482_v56 = vpop.eup %2481  ;;  %v2219_v57 = vpack.c.bf16 %v3313_v54, %v3310_v53  ;;  %v512_v15 = vmax.f32 %v480_v3, 1e-24  ;;  %v511_v18 = vmax.f32 %v478_v11, 1e-24 }
 0x13f   : > { %2214 = vmatpush1.bf16.xpose.msra.mxu1 %v2213_v31  ;;  %v2484_v59 = vpop.eup %2483  ;;  %v3322_v63 = vmul.f32 %v2482_v56, %v3201_v16 }
 0x140   : > { %2215 = vmatprep.subr.bf16.mxu1 %v4029_v34  ;;  %v3319_v62 = vmul.f32 %v2484_v59, %v3204_v17  ;;  %2493 = vrsqrt.f32 %v512_v15 }
 0x141   : > { %2495 = vrsqrt.f32 %v511_v18  ;;  %v484_v27 = vpop.xlane.xlu1 %483  ;;  %v482_v35 = vpop.xlane.xlu0 %481 }
 0x142   : > { %v2486_v7 = vpop.eup %2485  ;;  %v2222_v10 = vpack.c.bf16 %v3322_v63, %v3319_v62  ;;  %v514_v43 = vmax.f32 %v484_v27, 1e-24  ;;  %v513_v44 = vmax.f32 %v482_v35, 1e-24 }
 0x143   : > { %v2488_v14 = vpop.eup %2487  ;;  %v3331_v26 = vmul.f32 %v2486_v7, %v3211_v20 }
 0x144   : > { %v3328_v23 = vmul.f32 %v2488_v14, %v3214_v21  ;;  %2497 = vrsqrt.f32 %v514_v43 }
 0x145   : > { %2499 = vrsqrt.f32 %v513_v44  ;;  %v488_v50 = vpop.xlane.xlu1 %487  ;;  %v486_v55 = vpop.xlane.xlu0 %485 }
 0x146   : > { %v2490_v30 = vpop.eup %2489  ;;  %v2225_v31 = vpack.c.bf16 %v3331_v26, %v3328_v23  ;;  %v515_v58 = vmax.f32 %v486_v55, 1e-24 }
 0x147   : > { %2217 = vmatpush1.bf16.xpose.msra.mxu1 %v2216_v47  ;;  %v2492_v36 = vpop.eup %2491  ;;  %v3340_v48 = vmul.f32 %v2490_v30, %v3221_v24 }
 0x148   : > { %2218 = vmatprep.subr.bf16.mxu1 %v4029_v34  ;;  %v3337_v47 = vmul.f32 %v2492_v36, %v3224_v25 }
 0x149   : > { %v492_v61 = vpop.xlane.xlu1 %491 }
 0x14a   : > { %v2494_v51 = vpop.eup %2493  ;;  %v2228_v52 = vpack.c.bf16 %v3340_v48, %v3337_v47  ;;  %v518_v14 = vmax.f32 %v492_v61, 1e-24 }
 0x14b   : > { %v2496_v56 = vpop.eup %2495  ;;  %v3349_v60 = vmul.f32 %v2494_v51, %v3231_v28 }
 0x14c   : > { %v3346_v59 = vmul.f32 %v2496_v56, %v3234_v29 }
 0x14d   : > { %v496_v30 = vpop.xlane.xlu1 %495 }
 0x14e   : > { %v2498_v3 = vpop.eup %2497  ;;  %v2231_v7 = vpack.c.bf16 %v3349_v60, %v3346_v59  ;;  %v520_v44 = vmax.f32 %v496_v30, 1e-24 }
 0x14f   : > { %2220 = vmatpush1.bf16.xpose.msra.mxu1 %v2219_v57  ;;  %v516_v57 = vmax.f32 %v488_v50, 1e-24  ;;  %v2500_v11 = vpop.eup %2499  ;;  %v3358_v27 = vmul.f32 %v2498_v3, %v3241_v32 }
 0x150   : > { %2221 = vmatprep.subr.bf16.mxu1 %v4029_v34  ;;  %v3355_v18 = vmul.f32 %v2500_v11, %v3244_v33 }
 0x151   : > { %2501 = vrsqrt.f32 %v516_v57 }
 0x152   : > { %2503 = vrsqrt.f32 %v515_v58  ;;  %v2234_v35 = vpack.c.bf16 %v3358_v27, %v3355_v18 }
 0x153   : > { %2505 = vrsqrt.f32 %v518_v14 }
 0x157   : > { %2223 = vmatpush1.bf16.xpose.msra.mxu1 %v2222_v10  ;;  %v490_v10 = vpop.xlane.xlu0 %489 }
 0x158   : > { %2224 = vmatprep.subr.bf16.mxu1 %v4029_v34  ;;  %v517_v15 = vmax.f32 %v490_v10, 1e-24 }
 0x15a   : > { %2507 = vrsqrt.f32 %v517_v15 }
 0x15b   : > { %v494_v36 = vpop.xlane.xlu0 %493  ;;  %2509 = vrsqrt.f32 %v520_v44 }
 0x15c   : > { %v519_v50 = vmax.f32 %v494_v36, 1e-24 }
 0x15e   : > { %2511 = vrsqrt.f32 %v519_v50 }
 0x15f   : > { %2226 = vmatpush1.bf16.xpose.msra.mxu1 %v2225_v31  ;;  %v2502_v31 = vpop.eup %2501 }
 0x160   : > { %2227 = vmatprep.subr.bf16.mxu1 %v4029_v34  ;;  %v2504_v43 = vpop.eup %2503 }
 0x161   : > { %v563_v51 = vmul.f32 %v2504_v43, %v3256_v38  ;;  %v2506_v55 = vpop.eup %2505 }
 0x162   : > { %v566_v61 = vmul.f32 %v2506_v55, %v3263_v41 }
 0x164   : > { %v2508_v57 = vpop.eup %2507 }
 0x165   : > { %v565_v58 = vmul.f32 %v2508_v57, %v3266_v42  ;;  %v2510_v3 = vpop.eup %2509 }
 0x166   : > { %v568_v14 = vmul.f32 %v2510_v3, %v3273_v45 }
 0x167   : > { %2229 = vmatpush1.bf16.xpose.msra.mxu1 %v2228_v52  ;;  %v564_v52 = vmul.f32 %v2502_v31, %v3253_v37 }
 0x168   : > { %2230 = vmatprep.subr.bf16.mxu1 %v4029_v34  ;;  %v2512_v10 = vpop.eup %2511 }
 0x169   : > { %v2237_v56 = vpack.c.bf16 %v564_v52, %v563_v51  ;;  %v567_v11 = vmul.f32 %v2512_v10, %v3276_v46 }
 0x16b   : > { %v2243_v15 = vpack.c.bf16 %v568_v14, %v567_v11 }
 0x16f   : > { %2232 = vmatpush1.bf16.xpose.msra.mxu1 %v2231_v7  ;;  %v2240_v7 = vpack.c.bf16 %v566_v61, %v565_v58 }
 0x170   : > { %2233 = vmatprep.subr.bf16.mxu1 %v4029_v34 }
 0x177   : > { %2235 = vmatpush1.bf16.xpose.msra.mxu1 %v2234_v35 }
 0x178   : > { %2236 = vmatprep.subr.bf16.mxu1 %v4029_v34 }
 0x17f   : > { %2238 = vmatpush1.bf16.xpose.msra.mxu1 %v2237_v56 }
 0x180   : > { %2239 = vmatprep.subr.bf16.mxu1 %v4029_v34 }
 0x187   : > { %2241 = vmatpush1.bf16.xpose.msra.mxu1 %v2240_v7 }
 0x188   : > { %2242 = vmatprep.subr.bf16.mxu1 %v4029_v34 }
 0x18f   : > { %2244 = vmatpush1.bf16.xpose.msra.mxu1 %v2243_v15 }
 0x190   : > { %2313 = vmatprep.subr.bf16.mxu1 %v4029_v34 }
 0x196   : > { %634 = vmatmul.mubr.f32.vlgmr.msra.gmra.mrb[0].mxu1 %v3284_v4 }
 0x197   : > { %639 = vmatprep.mubr.f32.mxu1 %v4028_v49 }
 0x19a   : > { %640 = vmatmul.mubr.f32.gmra.mrb[2].mxu1 %v3287_v6 }
 0x19b   : > { %645 = vmatprep.mubr.f32.mxu1 %v4028_v49 }
 0x19e   : > { %646 = vmatmul.mubr.f32.gmra.mrb[4].mxu1 %v3293_v19 }
 0x19f   : > { %651 = vmatprep.mubr.f32.mxu1 %v4028_v49 }
 0x1a2   : > { %652 = vmatmul.mubr.f32.gmra.mrb[6].mxu1 %v3296_v22 }
 0x1a3   : > { %657 = vmatprep.mubr.f32.mxu1 %v4028_v49 }
 0x1a6   : > { %658 = vmatmul.mubr.f32.gmra.mrb[8].mxu1 %v3301_v39 }
 0x1a7   : > { %663 = vmatprep.mubr.f32.mxu1 %v4028_v49 }
 0x1aa   : > { %664 = vmatmul.mubr.f32.gmra.mrb[10].mxu1 %v3304_v40 }
 0x1ab   : > { %669 = vmatprep.mubr.f32.mxu1 %v4028_v49 }
 0x1ae   : > { %670 = vmatmul.mubr.f32.gmra.mrb[12].mxu1 %v3310_v53 }
 0x1af   : > { %675 = vmatprep.mubr.f32.mxu1 %v4028_v49 }
 0x1b2   : > { %676 = vmatmul.mubr.f32.gmra.mrb[14].mxu1 %v3313_v54 }
 0x1b3   : > { %681 = vmatprep.mubr.f32.mxu1 %v4028_v49 }
 0x1b6   : > { %682 = vmatmul.mubr.f32.gmra.mrb[16].mxu1 %v3319_v62 }
 0x1b7   : > { %687 = vmatprep.mubr.f32.mxu1 %v4028_v49 }
 0x1ba   : > { %688 = vmatmul.mubr.f32.gmra.mrb[18].mxu1 %v3322_v63 }
 0x1bb   : > { %693 = vmatprep.mubr.f32.mxu1 %v4028_v49 }
 0x1be   : > { %694 = vmatmul.mubr.f32.gmra.mrb[20].mxu1 %v3328_v23 }
 0x1bf   : > { %699 = vmatprep.mubr.f32.mxu1 %v4028_v49 }
 0x1c2   : > { %700 = vmatmul.mubr.f32.gmra.mrb[22].mxu1 %v3331_v26 }
 0x1c3   : > { %705 = vmatprep.mubr.f32.mxu1 %v4028_v49 }
 0x1c6   : > { %706 = vmatmul.mubr.f32.gmra.mrb[24].mxu1 %v3337_v47 }
 0x1c7   : > { %711 = vmatprep.mubr.f32.mxu1 %v4028_v49 }
 0x1ca   : > { %712 = vmatmul.mubr.f32.gmra.mrb[26].mxu1 %v3340_v48 }
 0x1cb   : > { %717 = vmatprep.mubr.f32.mxu1 %v4028_v49 }
 0x1ce   : > { %718 = vmatmul.mubr.f32.gmra.mrb[28].mxu1 %v3346_v59 }
 0x1cf   : > { %723 = vmatprep.mubr.f32.mxu1 %v4028_v49 }
 0x1d2   : > { %724 = vmatmul.mubr.f32.gmra.mrb[30].mxu1 %v3349_v60 }
 0x1d3   : > { %729 = vmatprep.mubr.f32.mxu1 %v4028_v49 }
 0x1d6   : > { %730 = vmatmul.mubr.f32.gmra.mrb[32].mxu1 %v3355_v18 }
 0x1d7   : > { %735 = vmatprep.mubr.f32.mxu1 %v4028_v49 }
 0x1da   : > { %736 = vmatmul.mubr.f32.gmra.mrb[34].mxu1 %v3358_v27 }
 0x1db   : > { %741 = vmatprep.mubr.f32.mxu1 %v4028_v49 }
 0x1de   : > { %742 = vmatmul.mubr.f32.gmra.mrb[36].mxu1 %v563_v51 }
 0x1df   : > { %747 = vmatprep.mubr.f32.mxu1 %v4028_v49 }
 0x1e2   : > { %748 = vmatmul.mubr.f32.gmra.mrb[38].mxu1 %v564_v52 }
 0x1e3   : > { %753 = vmatprep.mubr.f32.mxu1 %v4028_v49 }
 0x1e6   : > { %754 = vmatmul.mubr.f32.gmra.mrb[40].mxu1 %v565_v58 }
 0x1e7   : > { %759 = vmatprep.mubr.f32.mxu1 %v4028_v49 }
 0x1ea   : > { %760 = vmatmul.mubr.f32.gmra.mrb[42].mxu1 %v566_v61 }
 0x1eb   : > { %765 = vmatprep.mubr.f32.mxu1 %v4028_v49 }
 0x1ee   : > { %766 = vmatmul.mubr.f32.gmra.mrb[44].mxu1 %v567_v11 }
 0x1ef   : > { %771 = vmatprep.mubr.f32.mxu1 %v4028_v49 }
 0x1f2   : > { %772 = vmatmul.mubr.f32.gmra.mrb[46].mxu1 %v568_v14 }
 0x1f3   : > { %1757 = vmatprep.mubr.f32.mxu1 %v4028_v49 }
 0x269   : > { %v635_v4 = vpop.f32.mrb[0].mxu1 }
 0x26a   : > { %v637_v6 = vpop.f32.mrb[1].mxu1  ;;  %v3417_v22 = vmul.f32 0.022097087, %v635_v4 }
 0x26b   : > { %v3415_v19 = vmul.f32 0.022097087, %v637_v6 }
 0x26d   : > { %v641_v39 = vpop.f32.mrb[2].mxu1  ;;  %v827_v40 = vsel %vm826_vm0, %v3415_v19, -inf }
 0x26e   : > { %v643_v53 = vpop.f32.mrb[3].mxu1  ;;  %v828_v54 = vmax.f32 %v3417_v22, %v827_v40  ;;  %v3424_v63 = vmul.f32 0.022097087, %v641_v39 }
 0x26f   : > { %v3422_v62 = vmul.f32 0.022097087, %v643_v53 }
 0x270   : > { %829 = vmax.xlane.f32.xlu0 %v828_v54 }
 0x271   : > { %v647_v23 = vpop.f32.mrb[4].mxu1  ;;  %v831_v26 = vsel %vm826_vm0, %v3422_v62, -inf }
 0x272   : > { %v649_v47 = vpop.f32.mrb[5].mxu1  ;;  %v832_v48 = vmax.f32 %v3424_v63, %v831_v26  ;;  %v3431_v60 = vmul.f32 0.022097087, %v647_v23 }
 0x273   : > { %v3429_v59 = vmul.f32 0.022097087, %v649_v47 }
 0x274   : > { %833 = vmax.xlane.f32.xlu1 %v832_v48 }
 0x275   : > { %v653_v18 = vpop.f32.mrb[6].mxu1  ;;  %v835_v27 = vsel %vm826_vm0, %v3429_v59, -inf }
 0x276   : > { %v655_v30 = vpop.f32.mrb[7].mxu1  ;;  %v836_v31 = vmax.f32 %v3431_v60, %v835_v27  ;;  %v3438_v36 = vmul.f32 0.022097087, %v653_v18 }
 0x277   : > { %v3436_v35 = vmul.f32 0.022097087, %v655_v30 }
 0x278   : > { %837 = vmax.xlane.f32.xlu0 %v836_v31 }
 0x279   : > { %v659_v43 = vpop.f32.mrb[8].mxu1  ;;  %v839_v44 = vsel %vm826_vm0, %v3436_v35, -inf }
 0x27a   : > { %v661_v50 = vpop.f32.mrb[9].mxu1  ;;  %v840_v51 = vmax.f32 %v3438_v36, %v839_v44  ;;  %v3445_v55 = vmul.f32 0.022097087, %v659_v43 }
 0x27b   : > { %v3443_v52 = vmul.f32 0.022097087, %v661_v50 }
 0x27c   : > { %841 = vmax.xlane.f32.xlu1 %v840_v51 }
 0x27d   : > { %v665_v56 = vpop.f32.mrb[10].mxu1  ;;  %v843_v57 = vsel %vm826_vm0, %v3443_v52, -inf }
 0x27e   : > { %v667_v58 = vpop.f32.mrb[11].mxu1  ;;  %v844_v61 = vmax.f32 %v3445_v55, %v843_v57  ;;  %v3452_v7 = vmul.f32 0.022097087, %v665_v56 }
 0x27f   : > { %v3450_v3 = vmul.f32 0.022097087, %v667_v58  ;;  %v307_v58 = vadd.f32 %v3167_v2, %v3161_v0 }
 0x280   : > { %845 = vmax.xlane.f32.xlu0 %v844_v61 }
 0x281   : > { %v671_v10 = vpop.f32.mrb[12].mxu1  ;;  %v847_v11 = vsel %vm826_vm0, %v3450_v3, -inf }
 0x282   : > { %v673_v14 = vpop.f32.mrb[13].mxu1  ;;  %v848_v15 = vmax.f32 %v3452_v7, %v847_v11  ;;  %v3459_v6 = vmul.f32 0.022097087, %v671_v10 }
 0x283   : > { %v3457_v4 = vmul.f32 0.022097087, %v673_v14 }
 0x284   : > { %849 = vmax.xlane.f32.xlu1 %v848_v15 }
 0x285   : > { %v677_v39 = vpop.f32.mrb[14].mxu1  ;;  %v851_v40 = vsel %vm826_vm0, %v3457_v4, -inf }
 0x286   : > { %v679_v53 = vpop.f32.mrb[15].mxu1  ;;  %v852_v54 = vmax.f32 %v3459_v6, %v851_v40  ;;  %v3466_v26 = vmul.f32 0.022097087, %v677_v39  ;;  %v308_v40 = vadd.f32 %v307_v58, %v3164_v1 }
 0x287   : > { %v3464_v23 = vmul.f32 0.022097087, %v679_v53 }
 0x288   : > { %853 = vmax.xlane.f32.xlu0 %v852_v54 }
 0x289   : > { %v683_v47 = vpop.f32.mrb[16].mxu1  ;;  %v855_v48 = vsel %vm826_vm0, %v3464_v23, -inf }
 0x28a   : > { %v685_v18 = vpop.f32.mrb[17].mxu1  ;;  %v856_v27 = vmax.f32 %v3466_v26, %v855_v48  ;;  %v3473_v31 = vmul.f32 0.022097087, %v683_v47 }
 0x28b   : > { %v3471_v30 = vmul.f32 0.022097087, %v685_v18  ;;  %v309_v18 = vadd.f32 %v308_v40, %v3174_v5 }
 0x28c   : > { %857 = vmax.xlane.f32.xlu1 %v856_v27 }
 0x28d   : > { %v689_v43 = vpop.f32.mrb[18].mxu1  ;;  %v859_v44 = vsel %vm826_vm0, %v3471_v30, -inf  ;;  %v310_v58 = vadd.f32 %v309_v18, %v3184_v9 }
 0x28e   : > { %v691_v50 = vpop.f32.mrb[19].mxu1  ;;  %v860_v51 = vmax.f32 %v3473_v31, %v859_v44  ;;  %v3480_v57 = vmul.f32 0.022097087, %v689_v43 }
 0x28f   : > { %v3478_v56 = vmul.f32 0.022097087, %v691_v50 }
 0x290   : > { %861 = vmax.xlane.f32.xlu0 %v860_v51 }
 0x291   : > { %v695_v61 = vpop.f32.mrb[20].mxu1  ;;  %v863_v10 = vsel %vm826_vm0, %v3478_v56, -inf }
 0x292   : > { %v697_v11 = vpop.f32.mrb[21].mxu1  ;;  %v864_v14 = vmax.f32 %v3480_v57, %v863_v10  ;;  %v3489_v39 = vmul.f32 0.022097087, %v695_v61 }
 0x293   : > { %v3487_v15 = vmul.f32 0.022097087, %v697_v11 }
 0x294   : > { %865 = vmax.xlane.f32.xlu1 %v864_v14 }
 0x295   : > { %v701_v53 = vpop.f32.mrb[22].mxu1  ;;  %v867_v54 = vsel %vm826_vm0, %v3487_v15, -inf }
 0x296   : > { %v703_v47 = vpop.f32.mrb[23].mxu1  ;;  %v868_v0 = vmax.f32 %v3489_v39, %v867_v54  ;;  %v3497_v48 = vmul.f32 0.022097087, %v701_v53  ;;  %v311_v53 = vadd.f32 %v310_v58, %v3181_v8 }
 0x297   : > { %v3495_v2 = vmul.f32 0.022097087, %v703_v47 }
 0x298   : > { %869 = vmax.xlane.f32.xlu0 %v868_v0 }
 0x299   : > { %v707_v27 = vpop.f32.mrb[24].mxu1  ;;  %v871_v43 = vsel %vm826_vm0, %v3495_v2, -inf }
 0x29a   : > { %v709_v44 = vpop.f32.mrb[25].mxu1  ;;  %v872_v1 = vmax.f32 %v3497_v48, %v871_v43  ;;  %v3505_v51 = vmul.f32 0.022097087, %v707_v27  ;;  %v312_v43 = vadd.f32 %v311_v53, %v3194_v13 }
 0x29b   : > { %v3503_v50 = vmul.f32 0.022097087, %v709_v44 }
 0x29c   : > { %873 = vmax.xlane.f32.xlu1 %v872_v1 }
 0x29d   : > { %v713_v61 = vpop.f32.mrb[26].mxu1  ;;  %v875_v10 = vsel %vm826_vm0, %v3503_v50, -inf }
 0x29e   : > { %v715_v11 = vpop.f32.mrb[27].mxu1  ;;  %v876_v5 = vmax.f32 %v3505_v51, %v875_v10  ;;  %v3513_v40 = vmul.f32 0.022097087, %v713_v61 }
 0x29f   : > { %v3511_v14 = vmul.f32 0.022097087, %v715_v11  ;;  %v313_v11 = vadd.f32 %v312_v43, %v3191_v12 }
 0x2a0   : > { %877 = vmax.xlane.f32.xlu0 %v876_v5 }
 0x2a1   : > { %v719_v54 = vpop.f32.mrb[28].mxu1  ;;  %v879_v47 = vsel %vm826_vm0, %v3511_v14, -inf }
 0x2a2   : > { %v721_v0 = vpop.f32.mrb[29].mxu1  ;;  %v880_v9 = vmax.f32 %v3513_v40, %v879_v47  ;;  %v3521_v27 = vmul.f32 0.022097087, %v719_v54 }
 0x2a3   : > { %v3519_v18 = vmul.f32 0.022097087, %v721_v0 }
 0x2a4   : > { %881 = vmax.xlane.f32.xlu1 %v880_v9  ;;  %v314_v9 = vadd.f32 %v313_v11, %v3204_v17 }
 0x2a5   : > { %v725_v44 = vpop.f32.mrb[30].mxu1  ;;  %v883_v1 = vsel %vm826_vm0, %v3519_v18, -inf }
 0x2a6   : > { %v727_v61 = vpop.f32.mrb[31].mxu1  ;;  %v884_v8 = vmax.f32 %v3521_v27, %v883_v1  ;;  %v3529_v10 = vmul.f32 0.022097087, %v725_v44 }
 0x2a7   : > { %v3527_v58 = vmul.f32 0.022097087, %v727_v61 }
 0x2a8   : > { %885 = vmax.xlane.f32.xlu0 %v884_v8 }
 0x2a9   : > { %v731_v5 = vpop.f32.mrb[32].mxu1  ;;  %v887_v54 = vsel %vm826_vm0, %v3527_v58, -inf }
 0x2aa   : > { %v733_v47 = vpop.f32.mrb[33].mxu1  ;;  %v888_v13 = vmax.f32 %v3529_v10, %v887_v54  ;;  %v3537_v0 = vmul.f32 0.022097087, %v731_v5  ;;  %v315_v54 = vadd.f32 %v314_v9, %v3201_v16 }
 0x2ab   : > { %v3535_v53 = vmul.f32 0.022097087, %v733_v47 }
 0x2ac   : > { %889 = vmax.xlane.f32.xlu1 %v888_v13 }
 0x2ad   : > { %v737_v1 = vpop.f32.mrb[34].mxu1  ;;  %v891_v44 = vsel %vm826_vm0, %v3535_v53, -inf }
 0x2ae   : > { %v739_v61 = vpop.f32.mrb[35].mxu1  ;;  %v892_v12 = vmax.f32 %v3537_v0, %v891_v44  ;;  %v3545_v8 = vmul.f32 0.022097087, %v737_v1  ;;  %v316_v44 = vadd.f32 %v315_v54, %v3214_v21 }
 0x2af   : > { %v3543_v43 = vmul.f32 0.022097087, %v739_v61 }
 0x2b0   : > { %893 = vmax.xlane.f32.xlu0 %v892_v12 }
 0x2b1   : > { %v743_v47 = vpop.f32.mrb[36].mxu1  ;;  %v895_v5 = vsel %vm826_vm0, %v3543_v43, -inf }
 0x2b2   : > { %v745_v13 = vpop.f32.mrb[37].mxu1  ;;  %v896_v17 = vmax.f32 %v3545_v8, %v895_v5  ;;  %v3553_v49 = vmul.f32 0.022097087, %v743_v47  ;;  %v317_v5 = vadd.f32 %v316_v44, %v3211_v20 }
 0x2b3   : > { %v3551_v11 = vmul.f32 0.022097087, %v745_v13 }
 0x2b4   : > { %897 = vmax.xlane.f32.xlu1 %v896_v17 }
 0x2b5   : > { %4052 = vst [vmem:[#allocation16_spill] sm:$0xff] %v3551_v11  ;;  %v749_v61 = vpop.f32.mrb[38].mxu1  ;;  %v899_v1 = vsel %vm826_vm0, %v3551_v11, -inf }
 0x2b6   : > { %v751_v12 = vpop.f32.mrb[39].mxu1  ;;  %v900_v16 = vmax.f32 %v3553_v49, %v899_v1  ;;  %v3561_v34 = vmul.f32 0.022097087, %v749_v61  ;;  %v318_v1 = vadd.f32 %v317_v5, %v3224_v25 }
 0x2b7   : > { %v3559_v9 = vmul.f32 0.022097087, %v751_v12 }
 0x2b8   : > { %901 = vmax.xlane.f32.xlu0 %v900_v16 }
 0x2b9   : > { %4053 = vst [vmem:[#allocation17_spill] sm:$0xff] %v3559_v9  ;;  %v755_v13 = vpop.f32.mrb[40].mxu1  ;;  %v903_v47 = vsel %vm826_vm0, %v3559_v9, -inf }
 0x2ba   : > { %v757_v17 = vpop.f32.mrb[41].mxu1  ;;  %v904_v21 = vmax.f32 %v3561_v34, %v903_v47  ;;  %v3569_v11 = vmul.f32 0.022097087, %v755_v13  ;;  %v319_v47 = vadd.f32 %v318_v1, %v3221_v24 }
 0x2bb   : > { %v3567_v54 = vmul.f32 0.022097087, %v757_v17 }
 0x2bc   : > { %905 = vmax.xlane.f32.xlu1 %v904_v21 }
 0x2bd   : > { %4054 = vst [vmem:[#allocation18_spill] sm:$0xff] %v3567_v54  ;;  %v761_v12 = vpop.f32.mrb[42].mxu1  ;;  %v907_v61 = vsel %vm826_vm0, %v3567_v54, -inf }
 0x2be   : > { %v763_v16 = vpop.f32.mrb[43].mxu1  ;;  %v908_v20 = vmax.f32 %v3569_v11, %v907_v61  ;;  %v3577_v9 = vmul.f32 0.022097087, %v761_v12  ;;  %v320_v61 = vadd.f32 %v319_v47, %v3234_v29 }
 0x2bf   : > { %v3575_v44 = vmul.f32 0.022097087, %v763_v16 }
 0x2c0   : > { %909 = vmax.xlane.f32.xlu0 %v908_v20 }
 0x2c1   : > { %4055 = vst [vmem:[#allocation19_spill] sm:$0xff] %v3575_v44  ;;  %v767_v17 = vpop.f32.mrb[44].mxu1  ;;  %v911_v13 = vsel %vm826_vm0, %v3575_v44, -inf }
 0x2c2   : > { %v769_v21 = vpop.f32.mrb[45].mxu1  ;;  %v912_v25 = vmax.f32 %v3577_v9, %v911_v13  ;;  %v3585_v54 = vmul.f32 0.022097087, %v767_v17  ;;  %v321_v13 = vadd.f32 %v320_v61, %v3231_v28  ;;  %v4058_v28 = vmov 0.0|0.0   ;;  %v341_v61 = vld [vmem:[#allocation7 + $0x10] sm:$0xff] }
 0x2c3   : > { %v3583_v5 = vmul.f32 0.022097087, %v769_v21 }
 0x2c4   : > { %913 = vmax.xlane.f32.xlu1 %v912_v25  ;;  %v322_v29 = vadd.f32 %v321_v13, %v3244_v33  ;;  %v344_v33 = vld [vmem:[#allocation7 + $0x28] sm:$0xff] }
 0x2c5   : > { %4056 = vst [vmem:[#allocation20_spill] sm:$0xff] %v3583_v5  ;;  %v773_v16 = vpop.f32.mrb[46].mxu1  ;;  %v915_v12 = vsel %vm826_vm0, %v3583_v5, -inf }
 0x2c6   : > { %v775_v20 = vpop.f32.mrb[47].mxu1  ;;  %v916_v24 = vmax.f32 %v3585_v54, %v915_v12  ;;  %v3593_v44 = vmul.f32 0.022097087, %v773_v16  ;;  %v323_v47 = vadd.f32 %v322_v29, %v3241_v32  ;;  %v340_v16 = vld [vmem:[#allocation7 + $0x8] sm:$0xff]  ;;  %v343_v32 = vld [vmem:[#allocation7 + $0x20] sm:$0xff] }
 0x2c7   : > { %v3591_v1 = vmul.f32 0.022097087, %v775_v20  ;;  %v339_v20 = vld [vmem:[#allocation7] sm:$0xff] }
 0x2c8   : > { %917 = vmax.xlane.f32.xlu0 %v916_v24  ;;  %v324_v25 = vadd.f32 %v323_v47, %v3256_v38  ;;  %v2186_v5 = vpack.c.bf16 %v340_v16, %v339_v20  ;;  %v2192_v38 = vpack.c.bf16 %v344_v33, %v343_v32  ;;  %v353_v32 = vld [vmem:[#allocation7 + $0x70] sm:$0xff]  ;;  %v354_v33 = vld [vmem:[#allocation7 + $0x78] sm:$0xff] }
 0x2c9   : > { %4057 = vst [vmem:[#allocation21_spill] sm:$0xff] %v3591_v1  ;;  %v919_v17 = vsel %vm826_vm0, %v3591_v1, -inf  ;;  %v342_v1 = vld [vmem:[#allocation7 + $0x18] sm:$0xff] }
 0x2ca   : > { %v920_v21 = vmax.f32 %v3593_v44, %v919_v17  ;;  %v325_v12 = vadd.f32 %v324_v25, %v3253_v37  ;;  %2187 = vmatpush3.bf16.msra.mxu0 %v2186_v5  ;;  %v2189_v17 = vpack.c.bf16 %v342_v1, %v341_v61  ;;  %v346_v5 = vld [vmem:[#allocation7 + $0x38] sm:$0xff]  ;;  %v348_v1 = vld [vmem:[#allocation7 + $0x48] sm:$0xff]  ;;  %v349_v25 = vld [vmem:[#allocation7 + $0x50] sm:$0xff] }
 0x2cb   : > { %2188 = vmatprep.subr.bf16.mxu0 %v4058_v28  ;;  %v352_v61 = vld [vmem:[#allocation7 + $0x68] sm:$0xff] }
 0x2cc   : > { %921 = vmax.xlane.f32.xlu0 %v920_v21  ;;  %v326_v24 = vadd.f32 %v325_v12, %v3266_v42  ;;  %v345_v42 = vld [vmem:[#allocation7 + $0x30] sm:$0xff]  ;;  %v350_v12 = vld [vmem:[#allocation7 + $0x58] sm:$0xff] }
 0x2cd   : > { %v2195_v13 = vpack.c.bf16 %v346_v5, %v345_v42  ;;  %v2201_v16 = vpack.c.bf16 %v350_v12, %v349_v25  ;;  %v2207_v42 = vpack.c.bf16 %v354_v33, %v353_v32 }
 0x2ce   : > { %v327_v21 = vadd.f32 %v326_v24, %v3263_v41  ;;  %2190 = vmatpush3.bf16.msra.mxu0 %v2189_v17  ;;  %v347_v41 = vld [vmem:[#allocation7 + $0x40] sm:$0xff] }
 0x2cf   : > { %2191 = vmatprep.subr.bf16.mxu0 %v4058_v28  ;;  %v2198_v47 = vpack.c.bf16 %v348_v1, %v347_v41  ;;  %v351_v24 = vld [vmem:[#allocation7 + $0x60] sm:$0xff]  ;;  %v2664_v1 = vld [vmem:[%s3146_s29 + $0x8] sm:$0xff] }
 0x2d0   : > { %v328_v37 = vadd.f32 %v327_v21, %v3276_v46  ;;  %v4059_v46 = vmov 0.0   ;;  %v2204_v21 = vpack.c.bf16 %v352_v61, %v351_v24  ;;  %v2663_v41 = vld [vmem:[%s3146_s29] sm:$0xff]  ;;  %v2666_v24 = vld [vmem:[%s3146_s29 + $0x18] sm:$0xff] }
 0x2d1   : > { %2114 = vmatprep.mubr.msk.f32.mxu0 %vm2891_vm1, %v4059_v46  ;;  %v2665_v46 = vld [vmem:[%s3146_s29 + $0x10] sm:$0xff] }
 0x2d2   : > { %2193 = vmatpush3.bf16.msra.mxu0 %v2192_v38  ;;  %v329_v29 = vadd.f32 %v328_v37, %v3273_v45  ;;  %v2249_v61 = vpack.c.bf16 %v2666_v24, %v2665_v46 }
 0x2d3   : > { %2194 = vmatprep.subr.bf16.mxu0 %v4058_v28 }
 0x2d4   : > { %v330_v20 = vrot.slane %v329_v29, 4 }
 0x2d6   : > { %2196 = vmatpush3.bf16.msra.mxu0 %v2195_v13  ;;  %v331_v45 = vadd.f32 %v330_v20, %v329_v29  ;;  %v282_v13 = vld [vmem:[%s3138_s25] sm:$0xff] }
 0x2d7   : > { %2197 = vmatprep.subr.bf16.mxu0 %v4058_v28 }
 0x2d8   : > { %v332_v17 = vrot.slane %v331_v45, 2 }
 0x2da   : > { %2199 = vmatpush3.bf16.msra.mxu0 %v2198_v47  ;;  %v333_v38 = vadd.f32 %v332_v17, %v331_v45  ;;  %v2246_v47 = vpack.c.bf16 %v2664_v1, %v2663_v41 }
 0x2db   : > { %2200 = vmatprep.subr.bf16.mxu0 %v4058_v28 }
 0x2dc   : > { %v334_v37 = vrot.slane %v333_v38, 1 }
 0x2de   : > { %2202 = vmatpush3.bf16.msra.mxu0 %v2201_v16  ;;  %v335_v5 = vadd.f32 %v334_v37, %v333_v38  ;;  %v2668_v38 = vld [vmem:[%s3146_s29 + $0x20] sm:$0xff] }
 0x2df   : > { %2203 = vmatprep.subr.bf16.mxu0 %v4058_v28 }
 0x2e0   : > { %v337_v29 = vmul.f32 0.0052083335, %v335_v5 }
 0x2e2   : > { %2205 = vmatpush3.bf16.msra.mxu0 %v2204_v21  ;;  %v338_v25 = vadd.f32 %v337_v29, %v282_v13  ;;  %v2669_v29 = vld [vmem:[%s3146_s29 + $0x38] sm:$0xff] }
 0x2e3   : > { %2206 = vmatprep.subr.bf16.mxu0 %v4058_v28 }
 0x2e6   : > { %2208 = vmatpush3.bf16.msra.mxu0 %v2207_v42 }
 0x2e7   : > { %2245 = vmatprep.subr.bf16.mxu0 %v4058_v28 }
 0x2e9   : > { %2115 = vmatmul.mubr.f32.vlgmr.msra.gmra.mrb[0].mxu0 %v338_v25 }
 0x2ea   : > { %2247 = vmatpush1.bf16.msra.mxu0 %v2246_v47 }
 0x2eb   : > { %2248 = vmatprep.subr.bf16.mxu0 %v4058_v28 }
 0x2ee   : > { %2250 = vmatpush1.bf16.msra.mxu0 %v2249_v61 }
 0x2ef   : > { %2251 = vmatprep.subr.bf16.mxu0 %v4058_v28 }
 0x2fd   : > { %v830_v12 = vpop.xlane.xlu0 %829 }
 0x2fe   : > { %v923_v20 = vsub.f32 %v3417_v22, %v830_v12  ;;  %v924_v16 = vsub.f32 %v3415_v19, %v830_v12  ;;  %v2667_v22 = vld [vmem:[%s3146_s29 + $0x28] sm:$0xff] }
 0x2ff   : > { %v2252_v19 = vpack.c.bf16 %v2667_v22, %v2668_v38 }
 0x300   : > { %v971_v45 = vmul.f32 1.442695, %v923_v20  ;;  %v973_v17 = vmul.f32 1.442695, %v924_v16  ;;  %v2671_v20 = vld [vmem:[%s3146_s29 + $0x48] sm:$0xff] }
 0x301   : > { %v834_v21 = vpop.xlane.xlu1 %833  ;;  %2253 = vmatpush1.bf16.msra.mxu0 %v2252_v19 }
 0x302   : > { %2513 = vpow2.f32 %v971_v45  ;;  %v925_v32 = vsub.f32 %v3424_v63, %v834_v21  ;;  %v926_v33 = vsub.f32 %v3422_v62, %v834_v21  ;;  %v2670_v62 = vld [vmem:[%s3146_s29 + $0x30] sm:$0xff]  ;;  %2254 = vmatprep.subr.bf16.mxu0 %v4058_v28  ;;  %v2673_v21 = vld [vmem:[%s3146_s29 + $0x58] sm:$0xff] }
 0x303   : > { %2515 = vpow2.f32 %v973_v17  ;;  %v2255_v41 = vpack.c.bf16 %v2669_v29, %v2670_v62 }
 0x304   : > { %v975_v37 = vmul.f32 1.442695, %v925_v32  ;;  %v977_v42 = vmul.f32 1.442695, %v926_v33  ;;  %v2674_v32 = vld [vmem:[%s3146_s29 + $0x50] sm:$0xff] }
 0x305   : > { %v838_v5 = vpop.xlane.xlu0 %837  ;;  %2256 = vmatpush1.bf16.msra.mxu0 %v2255_v41 }
 0x306   : > { %2517 = vpow2.f32 %v975_v37  ;;  %v927_v13 = vsub.f32 %v3431_v60, %v838_v5  ;;  %v928_v63 = vsub.f32 %v3429_v59, %v838_v5  ;;  %v2672_v59 = vld [vmem:[%s3146_s29 + $0x40] sm:$0xff]  ;;  %2257 = vmatprep.subr.bf16.mxu0 %v4058_v28 }
 0x307   : > { %2519 = vpow2.f32 %v977_v42  ;;  %v2258_v16 = vpack.c.bf16 %v2671_v20, %v2672_v59  ;;  %v2678_v59 = vld [vmem:[%s3146_s29 + $0x70] sm:$0xff] }
 0x308   : > { %v979_v1 = vmul.f32 1.442695, %v927_v13  ;;  %v981_v47 = vmul.f32 1.442695, %v928_v63  ;;  %v2676_v63 = vld [vmem:[%s3146_s29 + $0x60] sm:$0xff] }
 0x309   : > { %v842_v25 = vpop.xlane.xlu1 %841  ;;  %2259 = vmatpush1.bf16.msra.mxu0 %v2258_v16 }
 0x30a   : > { %2521 = vpow2.f32 %v979_v1  ;;  %v929_v12 = vsub.f32 %v3438_v36, %v842_v25  ;;  %v930_v60 = vsub.f32 %v3436_v35, %v842_v25  ;;  %v2261_v36 = vpack.c.bf16 %v2673_v21, %v2674_v32  ;;  %2260 = vmatprep.subr.bf16.mxu0 %v4058_v28 }
 0x30b   : > { %2523 = vpow2.f32 %v981_v47 }
 0x30c   : > { %v3639_v46 = vpop.eup %2513  ;;  %v983_v24 = vmul.f32 1.442695, %v929_v12  ;;  %v985_v61 = vmul.f32 1.442695, %v930_v60 }
 0x30d   : > { %v3641_v45 = vpop.eup %2515  ;;  %v846_v17 = vpop.xlane.xlu0 %845  ;;  %2262 = vmatpush1.bf16.msra.mxu0 %v2261_v36 }
 0x30e   : > { %2525 = vpow2.f32 %v983_v24  ;;  %v931_v35 = vsub.f32 %v3445_v55, %v846_v17  ;;  %v932_v33 = vsub.f32 %v3443_v52, %v846_v17  ;;  %v1067_v22 = vsel %vm826_vm0, %v3641_v45, 0.0  ;;  %v2675_v55 = vld [vmem:[%s3146_s29 + $0x68] sm:$0xff]  ;;  %2263 = vmatprep.subr.bf16.mxu0 %v4058_v28 }
 0x30f   : > { %2527 = vpow2.f32 %v985_v61  ;;  %v1068_v38 = vadd.f32 %v3639_v46, %v1067_v22  ;;  %v2264_v52 = vpack.c.bf16 %v2675_v55, %v2676_v63  ;;  %v2679_v55 = vld [vmem:[%s3146_s29 + $0x88] sm:$0xff]  ;;  %v2680_v63 = vld [vmem:[%s3146_s29 + $0x80] sm:$0xff] }
 0x310   : > { %v3651_v19 = vpop.eup %2517  ;;  %v987_v37 = vmul.f32 1.442695, %v931_v35  ;;  %v989_v42 = vmul.f32 1.442695, %v932_v33 }
 0x311   : > { %v3653_v5 = vpop.eup %2519  ;;  %1069 = vadd.xlane.f32.xlu1 %v1068_v38  ;;  %v850_v13 = vpop.xlane.xlu1 %849  ;;  %2265 = vmatpush1.bf16.msra.mxu0 %v2264_v52  ;;  %v2270_v52 = vpack.c.bf16 %v2679_v55, %v2680_v63 }
 0x312   : > { %2529 = vpow2.f32 %v987_v37  ;;  %v933_v29 = vsub.f32 %v3452_v7, %v850_v13  ;;  %v934_v62 = vsub.f32 %v3450_v3, %v850_v13  ;;  %v1071_v41 = vsel %vm826_vm0, %v3653_v5, 0.0  ;;  %v2677_v7 = vld [vmem:[%s3146_s29 + $0x78] sm:$0xff]  ;;  %2266 = vmatprep.subr.bf16.mxu0 %v4058_v28 }
 0x313   : > { %2531 = vpow2.f32 %v989_v42  ;;  %v1072_v1 = vadd.f32 %v3651_v19, %v1071_v41  ;;  %v2267_v3 = vpack.c.bf16 %v2677_v7, %v2678_v59  ;;  %v2681_v7 = vld [vmem:[%s3146_s29 + $0x98] sm:$0xff]  ;;  %v2682_v59 = vld [vmem:[%s3146_s29 + $0x90] sm:$0xff] }
 0x314   : > { %v3663_v47 = vpop.eup %2521  ;;  %v991_v25 = vmul.f32 1.442695, %v933_v29  ;;  %v993_v12 = vmul.f32 1.442695, %v934_v62 }
 0x315   : > { %v3665_v60 = vpop.eup %2523  ;;  %1073 = vadd.xlane.f32.xlu1 %v1072_v1  ;;  %v854_v20 = vpop.xlane.xlu0 %853  ;;  %2268 = vmatpush1.bf16.msra.mxu0 %v2267_v3  ;;  %v2273_v3 = vpack.c.bf16 %v2681_v7, %v2682_v59 }
 0x316   : > { %2533 = vpow2.f32 %v991_v25  ;;  %v935_v16 = vsub.f32 %v3459_v6, %v854_v20  ;;  %v936_v24 = vsub.f32 %v3457_v4, %v854_v20  ;;  %v1075_v61 = vsel %vm826_vm0, %v3665_v60, 0.0  ;;  %2269 = vmatprep.subr.bf16.mxu0 %v4058_v28 }
 0x317   : > { %2535 = vpow2.f32 %v993_v12  ;;  %v1076_v17 = vadd.f32 %v3663_v47, %v1075_v61 }
 0x318   : > { %v3675_v21 = vpop.eup %2525  ;;  %v995_v32 = vmul.f32 1.442695, %v935_v16  ;;  %v997_v36 = vmul.f32 1.442695, %v936_v24 }
 0x319   : > { %v3677_v35 = vpop.eup %2527  ;;  %1077 = vadd.xlane.f32.xlu0 %v1076_v17  ;;  %v858_v6 = vpop.xlane.xlu1 %857  ;;  %2271 = vmatpush1.bf16.msra.mxu0 %v2270_v52 }
 0x31a   : > { %2537 = vpow2.f32 %v995_v32  ;;  %v937_v4 = vsub.f32 %v3466_v26, %v858_v6  ;;  %v938_v33 = vsub.f32 %v3464_v23, %v858_v6  ;;  %v1079_v22 = vsel %vm826_vm0, %v3677_v35, 0.0  ;;  %2272 = vmatprep.subr.bf16.mxu0 %v4058_v28 }
 0x31b   : > { %2539 = vpow2.f32 %v997_v36  ;;  %v1080_v38 = vadd.f32 %v3675_v21, %v1079_v22 }
 0x31c   : > { %v3685_v37 = vpop.eup %2529  ;;  %v999_v42 = vmul.f32 1.442695, %v937_v4  ;;  %v1001_v13 = vmul.f32 1.442695, %v938_v33  ;;  %v2683_v4 = vld [vmem:[%s3146_s29 + $0xa8] sm:$0xff]  ;;  %v2684_v33 = vld [vmem:[%s3146_s29 + $0xa0] sm:$0xff] }
 0x31d   : > { %v3689_v26 = vpop.eup %2531  ;;  %1081 = vadd.xlane.f32.xlu1 %v1080_v38  ;;  %v862_v23 = vpop.xlane.xlu0 %861  ;;  %2274 = vmatpush1.bf16.msra.mxu0 %v2273_v3  ;;  %v2276_v22 = vpack.c.bf16 %v2683_v4, %v2684_v33 }
 0x31e   : > { %2541 = vpow2.f32 %v999_v42  ;;  %v939_v29 = vsub.f32 %v3473_v31, %v862_v23  ;;  %v940_v62 = vsub.f32 %v3471_v30, %v862_v23  ;;  %v1083_v41 = vsel %vm826_vm0, %v3689_v26, 0.0  ;;  %2275 = vmatprep.subr.bf16.mxu0 %v4058_v28 }
 0x31f   : > { %2543 = vpow2.f32 %v1001_v13  ;;  %v1084_v1 = vadd.f32 %v3685_v37, %v1083_v41 }
 0x320   : > { %v3697_v25 = vpop.eup %2533  ;;  %v1003_v12 = vmul.f32 1.442695, %v939_v29  ;;  %v1005_v20 = vmul.f32 1.442695, %v940_v62  ;;  %v2685_v29 = vld [vmem:[%s3146_s29 + $0xb8] sm:$0xff]  ;;  %v2686_v62 = vld [vmem:[%s3146_s29 + $0xb0] sm:$0xff] }
 0x321   : > { %v3701_v31 = vpop.eup %2535  ;;  %1085 = vadd.xlane.f32.xlu0 %v1084_v1  ;;  %v866_v30 = vpop.xlane.xlu1 %865  ;;  %2277 = vmatpush1.bf16.msra.mxu0 %v2276_v22  ;;  %v2279_v41 = vpack.c.bf16 %v2685_v29, %v2686_v62 }
 0x322   : > { %2545 = vpow2.f32 %v1003_v12  ;;  %v941_v16 = vsub.f32 %v3480_v57, %v866_v30  ;;  %v942_v24 = vsub.f32 %v3478_v56, %v866_v30  ;;  %v1087_v61 = vsel %vm826_vm0, %v3701_v31, 0.0  ;;  %2278 = vmatprep.subr.bf16.mxu0 %v4058_v28 }
 0x323   : > { %2547 = vpow2.f32 %v1005_v20  ;;  %v1088_v17 = vadd.f32 %v3697_v25, %v1087_v61 }
 0x324   : > { %v3709_v32 = vpop.eup %2537  ;;  %v1007_v36 = vmul.f32 1.442695, %v941_v16  ;;  %v1009_v6 = vmul.f32 1.442695, %v942_v24 }
 0x325   : > { %v3713_v57 = vpop.eup %2539  ;;  %1089 = vadd.xlane.f32.xlu1 %v1088_v17  ;;  %v870_v56 = vpop.xlane.xlu0 %869  ;;  %2280 = vmatpush1.bf16.msra.mxu0 %v2279_v41 }
 0x326   : > { %2549 = vpow2.f32 %v1007_v36  ;;  %v943_v38 = vsub.f32 %v3489_v39, %v870_v56  ;;  %v944_v42 = vsub.f32 %v3487_v15, %v870_v56  ;;  %v1091_v13 = vsel %vm826_vm0, %v3713_v57, 0.0 }
 0x327   : > { %2551 = vpow2.f32 %v1009_v6  ;;  %v1092_v55 = vadd.f32 %v3709_v32, %v1091_v13 }
 0x328   : > { %v3721_v63 = vpop.eup %2541  ;;  %v1011_v52 = vmul.f32 1.442695, %v943_v38  ;;  %v1013_v23 = vmul.f32 1.442695, %v944_v42 }
 0x329   : > { %v3725_v1 = vpop.eup %2543  ;;  %1093 = vadd.xlane.f32.xlu0 %v1092_v55  ;;  %v874_v15 = vpop.xlane.xlu1 %873 }
 0x32a   : > { %2553 = vpow2.f32 %v1011_v52  ;;  %v945_v39 = vsub.f32 %v3497_v48, %v874_v15  ;;  %v946_v12 = vsub.f32 %v3495_v2, %v874_v15  ;;  %v1095_v20 = vsel %vm826_vm0, %v3725_v1, 0.0 }
 0x32b   : > { %2555 = vpow2.f32 %v1013_v23  ;;  %v1096_v7 = vadd.f32 %v3721_v63, %v1095_v20 }
 0x32c   : > { %v3732_v59 = vpop.eup %2545  ;;  %v1015_v3 = vmul.f32 1.442695, %v945_v39  ;;  %v1017_v30 = vmul.f32 1.442695, %v946_v12 }
 0x32d   : > { %v3734_v16 = vpop.eup %2547  ;;  %1097 = vadd.xlane.f32.xlu1 %v1096_v7  ;;  %v878_v24 = vpop.xlane.xlu0 %877 }
 0x32e   : > { %2557 = vpow2.f32 %v1015_v3  ;;  %v947_v48 = vsub.f32 %v3505_v51, %v878_v24  ;;  %v948_v2 = vsub.f32 %v3503_v50, %v878_v24  ;;  %v1099_v61 = vsel %vm826_vm0, %v3734_v16, 0.0 }
 0x32f   : > { %2559 = vpow2.f32 %v1017_v30  ;;  %v1100_v17 = vadd.f32 %v3732_v59, %v1099_v61 }
 0x330   : > { %v3741_v36 = vpop.eup %2549  ;;  %v1019_v6 = vmul.f32 1.442695, %v947_v48  ;;  %v1021_v4 = vmul.f32 1.442695, %v948_v2 }
 0x331   : > { %v3743_v33 = vpop.eup %2551  ;;  %1101 = vadd.xlane.f32.xlu0 %v1100_v17  ;;  %v882_v22 = vpop.xlane.xlu1 %881 }
 0x332   : > { %2561 = vpow2.f32 %v1019_v6  ;;  %v949_v56 = vsub.f32 %v3513_v40, %v882_v22  ;;  %v950_v51 = vsub.f32 %v3511_v14, %v882_v22  ;;  %v1103_v50 = vsel %vm826_vm0, %v3743_v33, 0.0 }
 0x333   : > { %2563 = vpow2.f32 %v1021_v4  ;;  %v1104_v38 = vadd.f32 %v3741_v36, %v1103_v50 }
 0x334   : > { %v3750_v42 = vpop.eup %2553  ;;  %v1023_v13 = vmul.f32 1.442695, %v949_v56  ;;  %v1025_v55 = vmul.f32 1.442695, %v950_v51 }
 0x335   : > { %v3752_v52 = vpop.eup %2555  ;;  %1105 = vadd.xlane.f32.xlu1 %v1104_v38  ;;  %v886_v23 = vpop.xlane.xlu0 %885 }
 0x336   : > { %2565 = vpow2.f32 %v1023_v13  ;;  %v951_v29 = vsub.f32 %v3521_v27, %v886_v23  ;;  %v952_v40 = vsub.f32 %v3519_v18, %v886_v23  ;;  %v1107_v14 = vsel %vm826_vm0, %v3752_v52, 0.0 }
 0x337   : > { %2567 = vpow2.f32 %v1025_v55  ;;  %v1108_v62 = vadd.f32 %v3750_v42, %v1107_v14 }
 0x338   : > { %v3759_v41 = vpop.eup %2557  ;;  %v1027_v15 = vmul.f32 1.442695, %v951_v29  ;;  %v1029_v39 = vmul.f32 1.442695, %v952_v40 }
 0x339   : > { %v3761_v12 = vpop.eup %2559  ;;  %1109 = vadd.xlane.f32.xlu0 %v1108_v62  ;;  %v890_v20 = vpop.xlane.xlu1 %889 }
 0x33a   : > { %2569 = vpow2.f32 %v1027_v15  ;;  %v953_v7 = vsub.f32 %v3529_v10, %v890_v20  ;;  %v954_v27 = vsub.f32 %v3527_v58, %v890_v20  ;;  %v1111_v18 = vsel %vm826_vm0, %v3761_v12, 0.0 }
 0x33b   : > { %2571 = vpow2.f32 %v1029_v39  ;;  %v1112_v3 = vadd.f32 %v3759_v41, %v1111_v18 }
 0x33c   : > { %v3768_v30 = vpop.eup %2561  ;;  %v1031_v24 = vmul.f32 1.442695, %v953_v7  ;;  %v1033_v48 = vmul.f32 1.442695, %v954_v27 }
 0x33d   : > { %v3770_v2 = vpop.eup %2563  ;;  %1113 = vadd.xlane.f32.xlu1 %v1112_v3  ;;  %v894_v61 = vpop.xlane.xlu0 %893 }
 0x33e   : > { %2573 = vpow2.f32 %v1031_v24  ;;  %v955_v17 = vsub.f32 %v3537_v0, %v894_v61  ;;  %v956_v10 = vsub.f32 %v3535_v53, %v894_v61  ;;  %v1115_v58 = vsel %vm826_vm0, %v3770_v2, 0.0 }
 0x33f   : > { %2575 = vpow2.f32 %v1033_v48  ;;  %v1116_v6 = vadd.f32 %v3768_v30, %v1115_v58 }
 0x340   : > { %v3777_v4 = vpop.eup %2565  ;;  %v1035_v22 = vmul.f32 1.442695, %v955_v17  ;;  %v1037_v56 = vmul.f32 1.442695, %v956_v10 }
 0x341   : > { %v3779_v51 = vpop.eup %2567  ;;  %1117 = vadd.xlane.f32.xlu0 %v1116_v6  ;;  %v898_v50 = vpop.xlane.xlu1 %897 }
 0x342   : > { %2577 = vpow2.f32 %v1035_v22  ;;  %v957_v38 = vsub.f32 %v3545_v8, %v898_v50  ;;  %v958_v0 = vsub.f32 %v3543_v43, %v898_v50  ;;  %v1119_v53 = vsel %vm826_vm0, %v3779_v51, 0.0  ;;  %v4060_v8 = vld [vmem:[#allocation16_spill] sm:$0xff] }
 0x343   : > { %2579 = vpow2.f32 %v1037_v56  ;;  %v1120_v13 = vadd.f32 %v3777_v4, %v1119_v53 }
 0x344   : > { %v3786_v55 = vpop.eup %2569  ;;  %v1039_v23 = vmul.f32 1.442695, %v957_v38  ;;  %v1041_v29 = vmul.f32 1.442695, %v958_v0 }
 0x345   : > { %v3788_v40 = vpop.eup %2571  ;;  %1121 = vadd.xlane.f32.xlu1 %v1120_v13  ;;  %v902_v14 = vpop.xlane.xlu0 %901 }
 0x346   : > { %2581 = vpow2.f32 %v1039_v23  ;;  %v959_v62 = vsub.f32 %v3553_v49, %v902_v14  ;;  %v960_v15 = vsub.f32 %v4060_v8, %v902_v14  ;;  %v1123_v43 = vsel %vm826_vm0, %v3788_v40, 0.0  ;;  %v4061_v49 = vld [vmem:[#allocation17_spill] sm:$0xff] }
 0x347   : > { %2583 = vpow2.f32 %v1041_v29  ;;  %v1124_v39 = vadd.f32 %v3786_v55, %v1123_v43 }
 0x348   : > { %v3795_v20 = vpop.eup %2573  ;;  %v1043_v7 = vmul.f32 1.442695, %v959_v62  ;;  %v1045_v27 = vmul.f32 1.442695, %v960_v15 }
 0x349   : > { %v3797_v18 = vpop.eup %2575  ;;  %1125 = vadd.xlane.f32.xlu0 %v1124_v39  ;;  %v906_v3 = vpop.xlane.xlu1 %905 }
 0x34a   : > { %2585 = vpow2.f32 %v1043_v7  ;;  %v961_v24 = vsub.f32 %v3561_v34, %v906_v3  ;;  %v962_v48 = vsub.f32 %v4061_v49, %v906_v3  ;;  %v1127_v61 = vsel %vm826_vm0, %v3797_v18, 0.0  ;;  %v4062_v34 = vld [vmem:[#allocation18_spill] sm:$0xff] }
 0x34b   : > { %2587 = vpow2.f32 %v1045_v27  ;;  %v1128_v17 = vadd.f32 %v3795_v20, %v1127_v61 }
 0x34c   : > { %v3804_v10 = vpop.eup %2577  ;;  %v1047_v58 = vmul.f32 1.442695, %v961_v24  ;;  %v1049_v6 = vmul.f32 1.442695, %v962_v48 }
 0x34d   : > { %v3806_v22 = vpop.eup %2579  ;;  %1129 = vadd.xlane.f32.xlu1 %v1128_v17  ;;  %v910_v56 = vpop.xlane.xlu0 %909 }
 0x34e   : > { %2589 = vpow2.f32 %v1047_v58  ;;  %v963_v50 = vsub.f32 %v3569_v11, %v910_v56  ;;  %v964_v38 = vsub.f32 %v4062_v34, %v910_v56  ;;  %v1131_v0 = vsel %vm826_vm0, %v3806_v22, 0.0  ;;  %v4063_v11 = vld [vmem:[#allocation19_spill] sm:$0xff] }
 0x34f   : > { %2591 = vpow2.f32 %v1049_v6  ;;  %v1132_v53 = vadd.f32 %v3804_v10, %v1131_v0 }
 0x350   : > { %v3813_v13 = vpop.eup %2581  ;;  %v1051_v23 = vmul.f32 1.442695, %v963_v50  ;;  %v1053_v29 = vmul.f32 1.442695, %v964_v38 }
 0x351   : > { %v3815_v14 = vpop.eup %2583  ;;  %1133 = vadd.xlane.f32.xlu0 %v1132_v53  ;;  %v914_v62 = vpop.xlane.xlu1 %913 }
 0x352   : > { %2593 = vpow2.f32 %v1051_v23  ;;  %v965_v8 = vsub.f32 %v3577_v9, %v914_v62  ;;  %v966_v15 = vsub.f32 %v4063_v11, %v914_v62  ;;  %v1135_v43 = vsel %vm826_vm0, %v3815_v14, 0.0  ;;  %v4064_v9 = vld [vmem:[#allocation20_spill] sm:$0xff] }
 0x353   : > { %2595 = vpow2.f32 %v1053_v29  ;;  %v1136_v39 = vadd.f32 %v3813_v13, %v1135_v43 }
 0x354   : > { %v3822_v7 = vpop.eup %2585  ;;  %v1055_v27 = vmul.f32 1.442695, %v965_v8  ;;  %v1057_v3 = vmul.f32 1.442695, %v966_v15 }
 0x355   : > { %v3824_v24 = vpop.eup %2587  ;;  %1137 = vadd.xlane.f32.xlu1 %v1136_v39  ;;  %v918_v49 = vpop.xlane.xlu0 %917 }
 0x356   : > { %2597 = vpow2.f32 %v1055_v27  ;;  %v967_v48 = vsub.f32 %v3585_v54, %v918_v49  ;;  %v968_v61 = vsub.f32 %v4064_v9, %v918_v49  ;;  %v1139_v17 = vsel %vm826_vm0, %v3824_v24, 0.0  ;;  %v4065_v54 = vld [vmem:[#allocation21_spill] sm:$0xff] }
 0x357   : > { %2599 = vpow2.f32 %v1057_v3  ;;  %v1140_v58 = vadd.f32 %v3822_v7, %v1139_v17 }
 0x358   : > { %v3831_v6 = vpop.eup %2589  ;;  %v1059_v56 = vmul.f32 1.442695, %v967_v48  ;;  %v1061_v50 = vmul.f32 1.442695, %v968_v61 }
 0x359   : > { %v3833_v34 = vpop.eup %2591  ;;  %1141 = vadd.xlane.f32.xlu0 %v1140_v58  ;;  %v922_v38 = vpop.xlane.xlu0 %921 }
 0x35a   : > { %2601 = vpow2.f32 %v1059_v56  ;;  %v969_v0 = vsub.f32 %v3593_v44, %v922_v38  ;;  %v970_v53 = vsub.f32 %v4065_v54, %v922_v38  ;;  %v1143_v23 = vsel %vm826_vm0, %v3833_v34, 0.0  ;;  %v1493_v54 = vld [vmem:[#allocation8 + $0x8] sm:$0xff] }
 0x35b   : > { %2603 = vpow2.f32 %v1061_v50  ;;  %v1144_v29 = vadd.f32 %v3831_v6, %v1143_v23 }
 0x35c   : > { %v3840_v62 = vpop.eup %2593  ;;  %v1063_v8 = vmul.f32 1.442695, %v969_v0  ;;  %v1065_v11 = vmul.f32 1.442695, %v970_v53  ;;  %v1492_v0 = vld [vmem:[#allocation8] sm:$0xff] }
 0x35d   : > { %v3842_v15 = vpop.eup %2595  ;;  %1145 = vadd.xlane.f32.xlu1 %v1144_v29  ;;  %v2281_v53 = vpack.c.bf16 %v1493_v54, %v1492_v0 }
 0x35e   : > { %2605 = vpow2.f32 %v1063_v8  ;;  %v1147_v43 = vsel %vm826_vm0, %v3842_v15, 0.0 }
 0x35f   : > { %2607 = vpow2.f32 %v1065_v11  ;;  %v1148_v44 = vadd.f32 %v3840_v62, %v1147_v43  ;;  %2282 = vmatprep.subr.bf16.mxu0 %v2281_v53  ;;  %v1494_v11 = vld [vmem:[#allocation8 + $0x10] sm:$0xff]  ;;  %v1495_v43 = vld [vmem:[#allocation8 + $0x18] sm:$0xff] }
 0x360   : > { %v3847_v39 = vpop.eup %2597 }
 0x361   : > { %v3849_v27 = vpop.eup %2599  ;;  %1149 = vadd.xlane.f32.xlu0 %v1148_v44 }
 0x362   : > { %v1151_v3 = vsel %vm826_vm0, %v3849_v27, 0.0 }
 0x363   : > { %v1152_v49 = vadd.f32 %v3847_v39, %v1151_v3 }
 0x364   : > { %v3854_v48 = vpop.eup %2601 }
 0x365   : > { %v3856_v9 = vpop.eup %2603  ;;  %1153 = vadd.xlane.f32.xlu1 %v1152_v49 }
 0x366   : > { %v1155_v61 = vsel %vm826_vm0, %v3856_v9, 0.0 }
 0x367   : > { %v1156_v17 = vadd.f32 %v3854_v48, %v1155_v61 }
 0x368   : > { %v3861_v58 = vpop.eup %2605 }
 0x369   : > { %v3863_v56 = vpop.eup %2607  ;;  %1157 = vadd.xlane.f32.xlu0 %v1156_v17  ;;  %v2285_v17 = vpack.c.bf16 %v1495_v43, %v1494_v11 }
 0x36a   : > { %v1159_v50 = vsel %vm826_vm0, %v3863_v56, 0.0 }
 0x36b   : > { %v1160_v38 = vadd.f32 %v3861_v58, %v1159_v50  ;;  %v1496_v50 = vld [vmem:[#allocation8 + $0x20] sm:$0xff] }
 0x36d   : > { %1161 = vadd.xlane.f32.xlu1 %v1160_v38  ;;  %v1497_v38 = vld [vmem:[#allocation8 + $0x28] sm:$0xff] }
 0x39e   : > { %v1070_v23 = vpop.xlane.xlu1 %1069 }
 0x39f   : > { %2609 = vrcp.f32 %v1070_v23 }
 0x3a2   : > { %v1074_v29 = vpop.xlane.xlu1 %1073 }
 0x3a3   : > { %2611 = vrcp.f32 %v1074_v29 }
 0x3a6   : > { %v1078_v8 = vpop.xlane.xlu0 %1077 }
 0x3a7   : > { %2613 = vrcp.f32 %v1078_v8  ;;  %v2289_v8 = vpack.c.bf16 %v1497_v38, %v1496_v50 }
 0x3a9   : > { %v2610_v44 = vpop.eup %2609 }
 0x3aa   : > { %v1082_v3 = vpop.xlane.xlu1 %1081  ;;  %v1188_v49 = vmul.f32 %v2610_v44, %v3641_v45  ;;  %v1187_v61 = vmul.f32 %v2610_v44, %v3639_v46  ;;  %v1498_v46 = vld [vmem:[#allocation8 + $0x30] sm:$0xff]  ;;  %v1499_v45 = vld [vmem:[#allocation8 + $0x38] sm:$0xff] }
 0x3ab   : > { %2615 = vrcp.f32 %v1082_v3 }
 0x3ac   : > { %1996 = vmatprep.mubr.msk.f32.mxu0 %vm826_vm0, %v1188_v49 }
 0x3ad   : > { %v2612_v0 = vpop.eup %2611  ;;  %1372 = vmatmul.mubr.f32.vlgmr.msra.gmra.mrb[2].mxu0 %v1187_v61 }
 0x3ae   : > { %v1086_v54 = vpop.xlane.xlu0 %1085  ;;  %v1190_v23 = vmul.f32 %v2612_v0, %v3653_v5  ;;  %v1189_v29 = vmul.f32 %v2612_v0, %v3651_v19  ;;  %2284 = vmatpush3.bf16.msra.mxu0 %v2281_v53  ;;  %v2293_v5 = vpack.c.bf16 %v1499_v45, %v1498_v46  ;;  %v1500_v19 = vld [vmem:[#allocation8 + $0x40] sm:$0xff]  ;;  %v1501_v53 = vld [vmem:[#allocation8 + $0x48] sm:$0xff] }
 0x3af   : > { %2617 = vrcp.f32 %v1086_v54  ;;  %2286 = vmatprep.subr.bf16.mxu0 %v2285_v17 }
 0x3b0   : > { %1997 = vmatprep.mubr.msk.f32.mxu0 %vm826_vm0, %v1190_v23 }
 0x3b1   : > { %v2614_v11 = vpop.eup %2613  ;;  %1377 = vmatmul.mubr.f32.gmra.mrb[4].mxu0 %v1189_v29 }
 0x3b2   : > { %v1090_v43 = vpop.xlane.xlu1 %1089  ;;  %v1192_v44 = vmul.f32 %v2614_v11, %v3665_v60  ;;  %v1191_v3 = vmul.f32 %v2614_v11, %v3663_v47  ;;  %2288 = vmatpush3.bf16.msra.mxu0 %v2285_v17  ;;  %v2297_v60 = vpack.c.bf16 %v1501_v53, %v1500_v19  ;;  %v1502_v47 = vld [vmem:[#allocation8 + $0x50] sm:$0xff]  ;;  %v1503_v17 = vld [vmem:[#allocation8 + $0x58] sm:$0xff] }
 0x3b3   : > { %2619 = vrcp.f32 %v1090_v43  ;;  %2290 = vmatprep.subr.bf16.mxu0 %v2289_v8 }
 0x3b4   : > { %1998 = vmatprep.mubr.msk.f32.mxu0 %vm826_vm0, %v1192_v44  ;;  %v1507_v44 = vld [vmem:[#allocation8 + $0x78] sm:$0xff] }
 0x3b5   : > { %v2616_v49 = vpop.eup %2615  ;;  %1382 = vmatmul.mubr.f32.gmra.mrb[6].mxu0 %v1191_v3 }
 0x3b6   : > { %v1094_v61 = vpop.xlane.xlu0 %1093  ;;  %v1194_v50 = vmul.f32 %v2616_v49, %v3677_v35  ;;  %v1193_v38 = vmul.f32 %v2616_v49, %v3675_v21  ;;  %2292 = vmatpush3.bf16.msra.mxu0 %v2289_v8  ;;  %v2301_v35 = vpack.c.bf16 %v1503_v17, %v1502_v47  ;;  %v1504_v21 = vld [vmem:[#allocation8 + $0x60] sm:$0xff]  ;;  %v1505_v8 = vld [vmem:[#allocation8 + $0x68] sm:$0xff] }
 0x3b7   : > { %2621 = vrcp.f32 %v1094_v61  ;;  %2294 = vmatprep.subr.bf16.mxu0 %v2293_v5 }
 0x3b8   : > { %1999 = vmatprep.mubr.msk.f32.mxu0 %vm826_vm0, %v1194_v50 }
 0x3b9   : > { %v2618_v0 = vpop.eup %2617  ;;  %1387 = vmatmul.mubr.f32.gmra.mrb[8].mxu0 %v1193_v38 }
 0x3ba   : > { %v1098_v54 = vpop.xlane.xlu1 %1097  ;;  %v1196_v23 = vmul.f32 %v2618_v0, %v3689_v26  ;;  %v1195_v29 = vmul.f32 %v2618_v0, %v3685_v37  ;;  %2296 = vmatpush3.bf16.msra.mxu0 %v2293_v5  ;;  %v2305_v26 = vpack.c.bf16 %v1505_v8, %v1504_v21  ;;  %v1506_v37 = vld [vmem:[#allocation8 + $0x70] sm:$0xff] }
 0x3bb   : > { %2623 = vrcp.f32 %v1098_v54  ;;  %2298 = vmatprep.subr.bf16.mxu0 %v2297_v60 }
 0x3bc   : > { %2000 = vmatprep.mubr.msk.f32.mxu0 %vm826_vm0, %v1196_v23  ;;  %v3899_v0 = vpop.f32.mrb[0].mxu0 }
 0x3bd   : > { %v2620_v46 = vpop.eup %2619  ;;  %1392 = vmatmul.mubr.f32.gmra.mrb[10].mxu0 %v1195_v29 }
 0x3be   : > { %v1102_v45 = vpop.xlane.xlu0 %1101  ;;  %v1198_v11 = vmul.f32 %v2620_v46, %v3701_v31  ;;  %v1197_v43 = vmul.f32 %v2620_v46, %v3697_v25  ;;  %2300 = vmatpush3.bf16.msra.mxu0 %v2297_v60  ;;  %v2309_v31 = vpack.c.bf16 %v1507_v44, %v1506_v37 }
 0x3bf   : > { %2625 = vrcp.f32 %v1102_v45  ;;  %2302 = vmatprep.subr.bf16.mxu0 %v2301_v35 }
 0x3c0   : > { %2001 = vmatprep.mubr.msk.f32.mxu0 %vm826_vm0, %v1198_v11 }
 0x3c1   : > { %v2622_v3 = vpop.eup %2621  ;;  %1397 = vmatmul.mubr.f32.gmra.mrb[12].mxu0 %v1197_v43 }
 0x3c2   : > { %v1106_v5 = vpop.xlane.xlu1 %1105  ;;  %v1200_v19 = vmul.f32 %v2622_v3, %v3713_v57  ;;  %v1199_v53 = vmul.f32 %v2622_v3, %v3709_v32  ;;  %2304 = vmatpush3.bf16.msra.mxu0 %v2301_v35 }
 0x3c3   : > { %2627 = vrcp.f32 %v1106_v5  ;;  %2306 = vmatprep.subr.bf16.mxu0 %v2305_v26 }
 0x3c4   : > { %2002 = vmatprep.mubr.msk.f32.mxu0 %vm826_vm0, %v1200_v19 }
 0x3c5   : > { %v2624_v25 = vpop.eup %2623  ;;  %1402 = vmatmul.mubr.f32.gmra.mrb[14].mxu0 %v1199_v53 }
 0x3c6   : > { %v1110_v49 = vpop.xlane.xlu0 %1109  ;;  %v1202_v61 = vmul.f32 %v2624_v25, %v3725_v1  ;;  %v1201_v50 = vmul.f32 %v2624_v25, %v3721_v63  ;;  %2308 = vmatpush3.bf16.msra.mxu0 %v2305_v26 }
 0x3c7   : > { %2629 = vrcp.f32 %v1110_v49  ;;  %2310 = vmatprep.subr.bf16.mxu0 %v2309_v31 }
 0x3c8   : > { %2003 = vmatprep.mubr.msk.f32.mxu0 %vm826_vm0, %v1202_v61 }
 0x3c9   : > { %v2626_v57 = vpop.eup %2625  ;;  %1407 = vmatmul.mubr.f32.gmra.mrb[16].mxu0 %v1201_v50 }
 0x3ca   : > { %v1114_v32 = vpop.xlane.xlu1 %1113  ;;  %v1204_v38 = vmul.f32 %v2626_v57, %v3734_v16  ;;  %v1203_v60 = vmul.f32 %v2626_v57, %v3732_v59  ;;  %2312 = vmatpush3.bf16.msra.mxu0 %v2309_v31  ;;  %v2116_v59 = vpop.f32.mrb[1].mxu0 }
 0x3cb   : > { %2631 = vrcp.f32 %v1114_v32  ;;  %2349 = vmatprep.subr.bf16.mxu0 %v4058_v28 }
 0x3cc   : > { %2004 = vmatprep.mubr.msk.f32.mxu0 %vm826_vm0, %v1204_v38 }
 0x3cd   : > { %v2628_v1 = vpop.eup %2627  ;;  %1412 = vmatmul.mubr.f32.gmra.mrb[18].mxu0 %v1203_v60 }
 0x3ce   : > { %v1118_v63 = vpop.xlane.xlu0 %1117  ;;  %v1206_v47 = vmul.f32 %v2628_v1, %v3743_v33  ;;  %v1205_v17 = vmul.f32 %v2628_v1, %v3741_v36 }
 0x3cf   : > { %2633 = vrcp.f32 %v1118_v63 }
 0x3d0   : > { %2005 = vmatprep.mubr.msk.f32.mxu0 %vm826_vm0, %v1206_v47 }
 0x3d1   : > { %v2630_v16 = vpop.eup %2629  ;;  %1417 = vmatmul.mubr.f32.gmra.mrb[20].mxu0 %v1205_v17 }
 0x3d2   : > { %v1122_v54 = vpop.xlane.xlu1 %1121  ;;  %v1208_v23 = vmul.f32 %v2630_v16, %v3752_v52  ;;  %v1207_v29 = vmul.f32 %v2630_v16, %v3750_v42 }
 0x3d3   : > { %2635 = vrcp.f32 %v1122_v54 }
 0x3d4   : > { %2006 = vmatprep.mubr.msk.f32.mxu0 %vm826_vm0, %v1208_v23 }
 0x3d5   : > { %v2632_v35 = vpop.eup %2631  ;;  %1422 = vmatmul.mubr.f32.gmra.mrb[22].mxu0 %v1207_v29 }
 0x3d6   : > { %v1126_v33 = vpop.xlane.xlu0 %1125  ;;  %v1210_v36 = vmul.f32 %v2632_v35, %v3761_v12  ;;  %v1209_v21 = vmul.f32 %v2632_v35, %v3759_v41 }
 0x3d7   : > { %2637 = vrcp.f32 %v1126_v33 }
 0x3d8   : > { %2007 = vmatprep.mubr.msk.f32.mxu0 %vm826_vm0, %v1210_v36 }
 0x3d9   : > { %v2634_v8 = vpop.eup %2633  ;;  %1427 = vmatmul.mubr.f32.gmra.mrb[24].mxu0 %v1209_v21 }
 0x3da   : > { %v1130_v46 = vpop.xlane.xlu1 %1129  ;;  %v1212_v52 = vmul.f32 %v2634_v8, %v3770_v2  ;;  %v1211_v42 = vmul.f32 %v2634_v8, %v3768_v30 }
 0x3db   : > { %2639 = vrcp.f32 %v1130_v46 }
 0x3dc   : > { %2008 = vmatprep.mubr.msk.f32.mxu0 %vm826_vm0, %v1212_v52 }
 0x3dd   : > { %v2636_v45 = vpop.eup %2635  ;;  %1432 = vmatmul.mubr.f32.gmra.mrb[26].mxu0 %v1211_v42 }
 0x3de   : > { %v1134_v11 = vpop.xlane.xlu0 %1133  ;;  %v1214_v12 = vmul.f32 %v2636_v45, %v3779_v51  ;;  %v1213_v41 = vmul.f32 %v2636_v45, %v3777_v4 }
 0x3df   : > { %2641 = vrcp.f32 %v1134_v11 }
 0x3e0   : > { %2009 = vmatprep.mubr.msk.f32.mxu0 %vm826_vm0, %v1214_v12 }
 0x3e1   : > { %v2638_v43 = vpop.eup %2637  ;;  %1437 = vmatmul.mubr.f32.gmra.mrb[28].mxu0 %v1213_v41 }
 0x3e2   : > { %v1138_v26 = vpop.xlane.xlu1 %1137  ;;  %v1216_v2 = vmul.f32 %v2638_v43, %v3788_v40  ;;  %v1215_v30 = vmul.f32 %v2638_v43, %v3786_v55 }
 0x3e3   : > { %2643 = vrcp.f32 %v1138_v26 }
 0x3e4   : > { %2010 = vmatprep.mubr.msk.f32.mxu0 %vm826_vm0, %v1216_v2 }
 0x3e5   : > { %v2640_v37 = vpop.eup %2639  ;;  %1442 = vmatmul.mubr.f32.gmra.mrb[30].mxu0 %v1215_v30 }
 0x3e6   : > { %v1142_v44 = vpop.xlane.xlu0 %1141  ;;  %v1218_v51 = vmul.f32 %v2640_v37, %v3797_v18  ;;  %v1217_v4 = vmul.f32 %v2640_v37, %v3795_v20 }
 0x3e7   : > { %2645 = vrcp.f32 %v1142_v44 }
 0x3e8   : > { %2011 = vmatprep.mubr.msk.f32.mxu0 %vm826_vm0, %v1218_v51 }
 0x3e9   : > { %v2642_v3 = vpop.eup %2641  ;;  %1447 = vmatmul.mubr.f32.gmra.mrb[32].mxu0 %v1217_v4 }
 0x3ea   : > { %v1146_v5 = vpop.xlane.xlu1 %1145  ;;  %v1220_v40 = vmul.f32 %v2642_v3, %v3806_v22  ;;  %v1219_v55 = vmul.f32 %v2642_v3, %v3804_v10 }
 0x3eb   : > { %2647 = vrcp.f32 %v1146_v5 }
 0x3ec   : > { %2012 = vmatprep.mubr.msk.f32.mxu0 %vm826_vm0, %v1220_v40 }
 0x3ed   : > { %v2644_v19 = vpop.eup %2643  ;;  %1452 = vmatmul.mubr.f32.gmra.mrb[34].mxu0 %v1219_v55 }
 0x3ee   : > { %v1150_v53 = vpop.xlane.xlu0 %1149  ;;  %v1222_v18 = vmul.f32 %v2644_v19, %v3815_v14  ;;  %v1221_v20 = vmul.f32 %v2644_v19, %v3813_v13 }
 0x3ef   : > { %2649 = vrcp.f32 %v1150_v53 }
 0x3f0   : > { %2013 = vmatprep.mubr.msk.f32.mxu0 %vm826_vm0, %v1222_v18 }
 0x3f1   : > { %v2646_v31 = vpop.eup %2645  ;;  %1457 = vmatmul.mubr.f32.gmra.mrb[36].mxu0 %v1221_v20 }
 0x3f2   : > { %v1154_v25 = vpop.xlane.xlu1 %1153  ;;  %v1224_v22 = vmul.f32 %v2646_v31, %v3824_v24  ;;  %v1223_v10 = vmul.f32 %v2646_v31, %v3822_v7 }
 0x3f3   : > { %2651 = vrcp.f32 %v1154_v25 }
 0x3f4   : > { %2014 = vmatprep.mubr.msk.f32.mxu0 %vm826_vm0, %v1224_v22 }
 0x3f5   : > { %v2648_v49 = vpop.eup %2647  ;;  %1462 = vmatmul.mubr.f32.gmra.mrb[38].mxu0 %v1223_v10 }
 0x3f6   : > { %v1158_v61 = vpop.xlane.xlu0 %1157  ;;  %v1226_v14 = vmul.f32 %v2648_v49, %v3833_v34  ;;  %v1225_v13 = vmul.f32 %v2648_v49, %v3831_v6 }
 0x3f7   : > { %2653 = vrcp.f32 %v1158_v61 }
 0x3f8   : > { %2015 = vmatprep.mubr.msk.f32.mxu0 %vm826_vm0, %v1226_v14 }
 0x3f9   : > { %v2650_v50 = vpop.eup %2649  ;;  %1467 = vmatmul.mubr.f32.gmra.mrb[40].mxu0 %v1225_v13 }
 0x3fa   : > { %v1162_v57 = vpop.xlane.xlu1 %1161  ;;  %v1228_v24 = vmul.f32 %v2650_v50, %v3842_v15  ;;  %v1227_v7 = vmul.f32 %v2650_v50, %v3840_v62 }
 0x3fb   : > { %2655 = vrcp.f32 %v1162_v57 }
 0x3fc   : > { %2016 = vmatprep.mubr.msk.f32.mxu0 %vm826_vm0, %v1228_v24 }
 0x3fd   : > { %v2652_v32 = vpop.eup %2651  ;;  %1472 = vmatmul.mubr.f32.gmra.mrb[42].mxu0 %v1227_v7 }
 0x3fe   : > { %v1230_v38 = vmul.f32 %v2652_v32, %v3849_v27  ;;  %v1229_v34 = vmul.f32 %v2652_v32, %v3847_v39 }
 0x400   : > { %2017 = vmatprep.mubr.msk.f32.mxu0 %vm826_vm0, %v1230_v38 }
 0x401   : > { %v2654_v6 = vpop.eup %2653  ;;  %1477 = vmatmul.mubr.f32.gmra.mrb[44].mxu0 %v1229_v34 }
 0x402   : > { %v1232_v60 = vmul.f32 %v2654_v6, %v3856_v9  ;;  %v1231_v1 = vmul.f32 %v2654_v6, %v3854_v48 }
 0x404   : > { %2018 = vmatprep.mubr.msk.f32.mxu0 %vm826_vm0, %v1232_v60 }
 0x405   : > { %v2656_v62 = vpop.eup %2655  ;;  %1482 = vmatmul.mubr.f32.gmra.mrb[46].mxu0 %v1231_v1 }
 0x406   : > { %v1234_v15 = vmul.f32 %v2656_v62, %v3863_v56  ;;  %v1233_v63 = vmul.f32 %v2656_v62, %v3861_v58 }
 0x408   : > { %2019 = vmatprep.mubr.msk.f32.mxu0 %vm826_vm0, %v1234_v15 }
 0x409   : > { %1487 = vmatmul.mubr.f32.gmra.mrb[48].mxu0 %v1233_v63 }
 0x480   : > { %v1373_v39 = vpop.f32.mrb[2].mxu0 }
 0x481   : > { %v1375_v27 = vpop.f32.mrb[3].mxu0  ;;  %2149 = vmatprep.mubr.f32.mxu0 %v1373_v39 }
 0x484   : > { %v1378_v47 = vpop.f32.mrb[4].mxu0 }
 0x485   : > { %v2350_v17 = vpack.c.bf16 %v1378_v47, %v1373_v39  ;;  %v1380_v16 = vpop.f32.mrb[5].mxu0  ;;  %2150 = vmatmul.mubr.f32.vlgmr.msra.gmra.mrb[50].mxu0 %v1378_v47 }
 0x487   : > { %2351 = vmatpush1.bf16.msra.mxu0 %v2350_v17 }
 0x488   : > { %v1383_v48 = vpop.f32.mrb[6].mxu0  ;;  %2352 = vmatprep.subr.bf16.mxu0 %v4058_v28 }
 0x489   : > { %v1385_v9 = vpop.f32.mrb[7].mxu0  ;;  %2152 = vmatprep.mubr.f32.mxu0 %v1383_v48 }
 0x48c   : > { %v1388_v59 = vpop.f32.mrb[8].mxu0 }
 0x48d   : > { %v2353_v56 = vpack.c.bf16 %v1388_v59, %v1383_v48  ;;  %v1390_v54 = vpop.f32.mrb[9].mxu0  ;;  %2153 = vmatmul.mubr.f32.gmra.mrb[52].mxu0 %v1388_v59 }
 0x48f   : > { %2354 = vmatpush1.bf16.msra.mxu0 %v2353_v56 }
 0x490   : > { %v1393_v58 = vpop.f32.mrb[10].mxu0  ;;  %2355 = vmatprep.subr.bf16.mxu0 %v4058_v28 }
 0x491   : > { %v1395_v23 = vpop.f32.mrb[11].mxu0  ;;  %2155 = vmatprep.mubr.f32.mxu0 %v1393_v58 }
 0x494   : > { %v1398_v29 = vpop.f32.mrb[12].mxu0 }
 0x495   : > { %v2356_v35 = vpack.c.bf16 %v1398_v29, %v1393_v58  ;;  %v1400_v33 = vpop.f32.mrb[13].mxu0  ;;  %2156 = vmatmul.mubr.f32.gmra.mrb[54].mxu0 %v1398_v29 }
 0x497   : > { %2357 = vmatpush1.bf16.msra.mxu0 %v2356_v35 }
 0x498   : > { %v1403_v36 = vpop.f32.mrb[14].mxu0  ;;  %2358 = vmatprep.subr.bf16.mxu0 %v4058_v28 }
 0x499   : > { %v1405_v21 = vpop.f32.mrb[15].mxu0  ;;  %2158 = vmatprep.mubr.f32.mxu0 %v1403_v36 }
 0x49c   : > { %v1408_v8 = vpop.f32.mrb[16].mxu0 }
 0x49d   : > { %v2359_v46 = vpack.c.bf16 %v1408_v8, %v1403_v36  ;;  %v1410_v52 = vpop.f32.mrb[17].mxu0  ;;  %2159 = vmatmul.mubr.f32.gmra.mrb[56].mxu0 %v1408_v8 }
 0x49f   : > { %2360 = vmatpush1.bf16.msra.mxu0 %v2359_v46 }
 0x4a0   : > { %v1413_v42 = vpop.f32.mrb[18].mxu0  ;;  %2361 = vmatprep.subr.bf16.mxu0 %v4058_v28 }
 0x4a1   : > { %v1415_v45 = vpop.f32.mrb[19].mxu0  ;;  %2161 = vmatprep.mubr.f32.mxu0 %v1413_v42 }
 0x4a4   : > { %v1418_v11 = vpop.f32.mrb[20].mxu0 }
 0x4a5   : > { %v2362_v12 = vpack.c.bf16 %v1418_v11, %v1413_v42  ;;  %v1420_v41 = vpop.f32.mrb[21].mxu0  ;;  %2162 = vmatmul.mubr.f32.gmra.mrb[58].mxu0 %v1418_v11 }
 0x4a7   : > { %2363 = vmatpush1.bf16.msra.mxu0 %v2362_v12 }
 0x4a8   : > { %v1423_v43 = vpop.f32.mrb[22].mxu0  ;;  %2364 = vmatprep.subr.bf16.mxu0 %v4058_v28 }
 0x4a9   : > { %v1425_v26 = vpop.f32.mrb[23].mxu0  ;;  %2164 = vmatprep.mubr.f32.mxu0 %v1423_v43 }
 0x4ac   : > { %v1428_v2 = vpop.f32.mrb[24].mxu0 }
 0x4ad   : > { %v2365_v30 = vpack.c.bf16 %v1428_v2, %v1423_v43  ;;  %v1430_v37 = vpop.f32.mrb[25].mxu0  ;;  %2165 = vmatmul.mubr.f32.gmra.mrb[60].mxu0 %v1428_v2 }
 0x4af   : > { %2366 = vmatpush1.bf16.msra.mxu0 %v2365_v30 }
 0x4b0   : > { %v1433_v44 = vpop.f32.mrb[26].mxu0  ;;  %2367 = vmatprep.subr.bf16.mxu0 %v4058_v28 }
 0x4b1   : > { %v1435_v51 = vpop.f32.mrb[27].mxu0  ;;  %2167 = vmatprep.mubr.f32.mxu0 %v1433_v44 }
 0x4b4   : > { %v1438_v4 = vpop.f32.mrb[28].mxu0 }
 0x4b5   : > { %v2368_v3 = vpack.c.bf16 %v1438_v4, %v1433_v44  ;;  %v1440_v5 = vpop.f32.mrb[29].mxu0  ;;  %2168 = vmatmul.mubr.f32.gmra.mrb[62].mxu0 %v1438_v4 }
 0x4b7   : > { %2369 = vmatpush1.bf16.msra.mxu0 %v2368_v3 }
 0x4b8   : > { %v1443_v40 = vpop.f32.mrb[30].mxu0  ;;  %2370 = vmatprep.subr.bf16.mxu0 %v4058_v28 }
 0x4b9   : > { %v1445_v55 = vpop.f32.mrb[31].mxu0  ;;  %2170 = vmatprep.mubr.f32.mxu0 %v1443_v40 }
 0x4bc   : > { %v1448_v19 = vpop.f32.mrb[32].mxu0 }
 0x4bd   : > { %v2371_v53 = vpack.c.bf16 %v1448_v19, %v1443_v40  ;;  %v1450_v18 = vpop.f32.mrb[33].mxu0  ;;  %2171 = vmatmul.mubr.f32.gmra.mrb[64].mxu0 %v1448_v19 }
 0x4bf   : > { %2372 = vmatpush1.bf16.msra.mxu0 %v2371_v53 }
 0x4c0   : > { %v1453_v20 = vpop.f32.mrb[34].mxu0  ;;  %2373 = vmatprep.subr.bf16.mxu0 %v4058_v28 }
 0x4c1   : > { %v1455_v31 = vpop.f32.mrb[35].mxu0  ;;  %2173 = vmatprep.mubr.f32.mxu0 %v1453_v20 }
 0x4c4   : > { %v1458_v25 = vpop.f32.mrb[36].mxu0 }
 0x4c5   : > { %v2374_v22 = vpack.c.bf16 %v1458_v25, %v1453_v20  ;;  %v1460_v10 = vpop.f32.mrb[37].mxu0  ;;  %2174 = vmatmul.mubr.f32.gmra.mrb[66].mxu0 %v1458_v25 }
 0x4c7   : > { %2375 = vmatpush1.bf16.msra.mxu0 %v2374_v22 }
 0x4c8   : > { %v1463_v49 = vpop.f32.mrb[38].mxu0  ;;  %2376 = vmatprep.subr.bf16.mxu0 %v4058_v28 }
 0x4c9   : > { %v1465_v61 = vpop.f32.mrb[39].mxu0  ;;  %2176 = vmatprep.mubr.f32.mxu0 %v1463_v49 }
 0x4cc   : > { %v1468_v14 = vpop.f32.mrb[40].mxu0 }
 0x4cd   : > { %v2377_v13 = vpack.c.bf16 %v1468_v14, %v1463_v49  ;;  %v1470_v50 = vpop.f32.mrb[41].mxu0  ;;  %2177 = vmatmul.mubr.f32.gmra.mrb[68].mxu0 %v1468_v14 }
 0x4cf   : > { %2378 = vmatpush1.bf16.msra.mxu0 %v2377_v13 }
 0x4d0   : > { %v1473_v57 = vpop.f32.mrb[42].mxu0  ;;  %2379 = vmatprep.subr.bf16.mxu0 %v4058_v28 }
 0x4d1   : > { %v1475_v24 = vpop.f32.mrb[43].mxu0  ;;  %2179 = vmatprep.mubr.f32.mxu0 %v1473_v57 }
 0x4d4   : > { %v1478_v7 = vpop.f32.mrb[44].mxu0 }
 0x4d5   : > { %v2380_v32 = vpack.c.bf16 %v1478_v7, %v1473_v57  ;;  %v1480_v38 = vpop.f32.mrb[45].mxu0  ;;  %2180 = vmatmul.mubr.f32.gmra.mrb[70].mxu0 %v1478_v7 }
 0x4d7   : > { %2381 = vmatpush1.bf16.msra.mxu0 %v2380_v32 }
 0x4d8   : > { %v1483_v34 = vpop.f32.mrb[46].mxu0  ;;  %2382 = vmatprep.subr.bf16.mxu0 %v4058_v28 }
 0x4d9   : > { %v1485_v6 = vpop.f32.mrb[47].mxu0  ;;  %2182 = vmatprep.mubr.f32.mxu0 %v1483_v34 }
 0x4dc   : > { %v1488_v60 = vpop.f32.mrb[48].mxu0 }
 0x4dd   : > { %v2383_v1 = vpack.c.bf16 %v1488_v60, %v1483_v34  ;;  %v1490_v62 = vpop.f32.mrb[49].mxu0  ;;  %2183 = vmatmul.mubr.f32.gmra.mrb[72].mxu0 %v1488_v60 }
 0x4df   : > { %2384 = vmatpush1.bf16.msra.mxu0 %v2383_v1 }
 0x558   : > { %v2151_v15 = vpop.f32.mrb[50].mxu0 }
 0x559   : > { %v1574_v63 = vpop.f32.mrb[51].mxu0 }
 0x55a   : > { %v2314_v39 = vpack.c.bf16 %v2151_v15, %v1574_v63 }
 0x55c   : > { %2315 = vmatpush1.bf16.xpose.msra.mxu1 %v2314_v39 }
 0x55d   : > { %2316 = vmatprep.subr.bf16.mxu1 %v4058_v28 }
 0x560   : > { %v2154_v27 = vpop.f32.mrb[52].mxu0 }
 0x561   : > { %v1584_v47 = vpop.f32.mrb[53].mxu0 }
 0x562   : > { %v2317_v17 = vpack.c.bf16 %v2154_v27, %v1584_v47 }
 0x564   : > { %2318 = vmatpush1.bf16.xpose.msra.mxu1 %v2317_v17 }
 0x565   : > { %2319 = vmatprep.subr.bf16.mxu1 %v4058_v28 }
 0x568   : > { %v2157_v16 = vpop.f32.mrb[54].mxu0 }
 0x569   : > { %v1594_v48 = vpop.f32.mrb[55].mxu0 }
 0x56a   : > { %v2320_v9 = vpack.c.bf16 %v2157_v16, %v1594_v48 }
 0x56c   : > { %2321 = vmatpush1.bf16.xpose.msra.mxu1 %v2320_v9 }
 0x56d   : > { %2322 = vmatprep.subr.bf16.mxu1 %v4058_v28 }
 0x570   : > { %v2160_v59 = vpop.f32.mrb[56].mxu0 }
 0x571   : > { %v1604_v56 = vpop.f32.mrb[57].mxu0 }
 0x572   : > { %v2323_v54 = vpack.c.bf16 %v2160_v59, %v1604_v56 }
 0x574   : > { %2324 = vmatpush1.bf16.xpose.msra.mxu1 %v2323_v54 }
 0x575   : > { %2325 = vmatprep.subr.bf16.mxu1 %v4058_v28 }
 0x578   : > { %v2163_v58 = vpop.f32.mrb[58].mxu0 }
 0x579   : > { %v1614_v23 = vpop.f32.mrb[59].mxu0 }
 0x57a   : > { %v2326_v29 = vpack.c.bf16 %v2163_v58, %v1614_v23 }
 0x57c   : > { %2327 = vmatpush1.bf16.xpose.msra.mxu1 %v2326_v29 }
 0x57d   : > { %2328 = vmatprep.subr.bf16.mxu1 %v4058_v28 }
 0x580   : > { %v2166_v35 = vpop.f32.mrb[60].mxu0 }
 0x581   : > { %v1624_v33 = vpop.f32.mrb[61].mxu0 }
 0x582   : > { %v2329_v36 = vpack.c.bf16 %v2166_v35, %v1624_v33 }
 0x584   : > { %2330 = vmatpush1.bf16.xpose.msra.mxu1 %v2329_v36 }
 0x585   : > { %2331 = vmatprep.subr.bf16.mxu1 %v4058_v28 }
 0x588   : > { %v2169_v21 = vpop.f32.mrb[62].mxu0 }
 0x589   : > { %v1634_v8 = vpop.f32.mrb[63].mxu0 }
 0x58a   : > { %v2332_v46 = vpack.c.bf16 %v2169_v21, %v1634_v8 }
 0x58c   : > { %2333 = vmatpush1.bf16.xpose.msra.mxu1 %v2332_v46 }
 0x58d   : > { %2334 = vmatprep.subr.bf16.mxu1 %v4058_v28 }
 0x590   : > { %v2172_v52 = vpop.f32.mrb[64].mxu0 }
 0x591   : > { %v1644_v42 = vpop.f32.mrb[65].mxu0 }
 0x592   : > { %v2335_v45 = vpack.c.bf16 %v2172_v52, %v1644_v42 }
 0x594   : > { %2336 = vmatpush1.bf16.xpose.msra.mxu1 %v2335_v45 }
 0x595   : > { %2337 = vmatprep.subr.bf16.mxu1 %v4058_v28 }
 0x598   : > { %v2175_v11 = vpop.f32.mrb[66].mxu0 }
 0x599   : > { %v1654_v12 = vpop.f32.mrb[67].mxu0 }
 0x59a   : > { %v2338_v41 = vpack.c.bf16 %v2175_v11, %v1654_v12 }
 0x59c   : > { %2339 = vmatpush1.bf16.xpose.msra.mxu1 %v2338_v41 }
 0x59d   : > { %2340 = vmatprep.subr.bf16.mxu1 %v4058_v28 }
 0x5a0   : > { %v2178_v43 = vpop.f32.mrb[68].mxu0 }
 0x5a1   : > { %v1664_v26 = vpop.f32.mrb[69].mxu0 }
 0x5a2   : > { %v2341_v2 = vpack.c.bf16 %v2178_v43, %v1664_v26 }
 0x5a4   : > { %2342 = vmatpush1.bf16.xpose.msra.mxu1 %v2341_v2 }
 0x5a5   : > { %2343 = vmatprep.subr.bf16.mxu1 %v4058_v28 }
 0x5a8   : > { %v2181_v30 = vpop.f32.mrb[70].mxu0 }
 0x5a9   : > { %v1674_v37 = vpop.f32.mrb[71].mxu0 }
 0x5aa   : > { %v2344_v44 = vpack.c.bf16 %v2181_v30, %v1674_v37 }
 0x5ac   : > { %2345 = vmatpush1.bf16.xpose.msra.mxu1 %v2344_v44 }
 0x5ad   : > { %2346 = vmatprep.subr.bf16.mxu1 %v4058_v28 }
 0x5b0   : > { %v2184_v51 = vpop.f32.mrb[72].mxu0 }
 0x5b1   : > { %v1684_v4 = vpop.f32.mrb[73].mxu0 }
 0x5b2   : > { %v2347_v3 = vpack.c.bf16 %v2184_v51, %v1684_v4 }
 0x5b4   : > { %2348 = vmatpush1.bf16.xpose.msra.mxu1 %v2347_v3 }
 0x5bb   : > { %1758 = vmatmul.mubr.f32.vlgmr.msra.gmra.mrb[48].mxu1 %v3899_v0 }
 0x68e   : > { %v1759_v5 = vpop.f32.mrb[48].mxu1 }
 0x68f   : > { %v1761_v40 = vpop.f32.mrb[49].mxu1  ;;  %v1764_v19 = vmul.f32 0.022097087, %v1759_v5 }
 0x690   : > { %v1765_v55 = vmul.f32 0.022097087, %v1761_v40 }
 0x692   : > { %v1766_v53 = vsel %vm826_vm0, %v1765_v55, -inf }
 0x693   : > { %v1767_v18 = vmax.f32 %v1764_v19, %v1766_v53 }
 0x695   : > { %1768 = vmax.xlane.f32.xlu0 %v1767_v18 }
 0x722   : > { %v1769_v20 = vpop.xlane.xlu0 %1768 }
 0x723   : > { %v1770_v31 = vsub.f32 %v1764_v19, %v1769_v20  ;;  %v1771_v25 = vsub.f32 %v1765_v55, %v1769_v20 }
 0x725   : > { %v1772_v22 = vmul.f32 1.442695, %v1770_v31  ;;  %v1774_v28 = vmul.f32 1.442695, %v1771_v25 }
 0x727   : > { %2657 = vpow2.f32 %v1772_v22 }
 0x728   : > { %2659 = vpow2.f32 %v1774_v28 }
 0x731   : > { %v2658_v10 = vpop.eup %2657 }
 0x732   : > { %v2660_v49 = vpop.eup %2659 }
 0x733   : > { %v1776_v0 = vsel %vm826_vm0, %v2660_v49, 0.0 }
 0x734   : > { %v1777_v61 = vadd.f32 %v2658_v10, %v1776_v0 }
 0x736   : > { %1778 = vadd.xlane.f32.xlu1 %v1777_v61 }
 0x7c3   : > { %v1779_v14 = vpop.xlane.xlu1 %1778 }
 0x7c4   : > { %2661 = vrcp.f32 %v1779_v14 }
 0x7ce   : > { %v2662_v13 = vpop.eup %2661 }
 0x7cf   : > { %v1781_v50 = vmul.f32 %v2662_v13, %v2658_v10  ;;  %v1782_v57 = vmul.f32 %v2662_v13, %v2660_v49 }
 0x7d1   : > { %2020 = vmatprep.mubr.msk.f32.mxu0 %vm826_vm0, %v1782_v57 }
 0x7d2   : > { %1851 = vmatmul.mubr.f32.vlgmr.msra.gmra.mrb[74].mxu0 %v1781_v50 }
 0x8a5   : > { %v1852_v24 = vpop.f32.mrb[74].mxu0 }
 0x8a6   : > { %1856 = vst [vmem:[%s281_s21] sm:$0xff] %v1852_v24  ;;  %v1854_v7 = vpop.f32.mrb[75].mxu0 }
 0x8a7   : > { %2816 = shalt.err (!%p2813_p11)
}
 0x8a8   : > { %s2817_s20 = scalar_lea.hbm %s3977_s27, 128  ;;  %s2821_s23 = scalar_lea.hbm %s4022_s4, 512 }
 0x8a9   : > { %p2818_p0 = scmp.ne.s32.totalorder %s3977_s27, %s2817_s20  ;;  %p2822_p13 = scmp.lt.u32.totalorder %s3977_s27, %s4022_s4 }
 0x8aa   : > { %p2823_p3 = scmp.lt.u32.totalorder %s2821_s23, %s2817_s20  ;;  %p2825_p9 = scmp.lt.u32.totalorder %s2817_s20, %s3977_s27 }
 0x8ab   : > { %p2819_p2 = pnand %p2818_p0, %p3036_p6 }
 0x8ac   : > { %p2824_p7 = por %p2823_p3, %p2822_p13 }
 0x8ad   : > { %p2820_p10 = pneg %p2819_p2 }
 0x8ae   : > { %p2826_p12 = por %p2825_p9, %p2824_p7 }
 0x8b0   : > { %p2827_p5 = pnand %p2826_p12, %p2820_p10 }
 0x8b2   : > { %2830 = shalt.err (!%p2827_p5)
}
 0x8b3   : > { %2400 = dma.vmem_to_hbm [thread:$0]  (%p3036_p6), %s3972_s7, 128, %s3977_s27, %s1858_s28  }
 0x8b4 PF: > { %p2425_p1 = scmp.ge.s32.totalorder %s2881_s18, 2  ;;  %s1883_s29 = sand.u32 1, %s2869_s15  }
 0x8b5   : > { %p4066_p4 = scmp.ne.s32.totalorder %s4038_s22, 0  ;;  %s1884_s21 = scalar_lea.sflag [#allocation4], %s1883_s29 }
 0x8b7   : > { %p2417_p8 = pnand %p2425_p1, %p4066_p4 }
 0x8b9   : > { %2864 = dma.done.wait (!%p2417_p8), %s1884_s21, 128  }
 0x8ba   : > { %2866 = vsyncadd (!%p2417_p8), %s1884_s21, 4294967168  ;;  %p21_p11 = scmp.ge.s32.totalorder %s3026_s26, 6   ;;  %s4067_s15 = smov %s2873_s16 }
 0x8bb   : > { %s4068_s16 = smov %s2877_s17  ;;  %s4069_s17 = smov %s3042_s14 }
 0x8bc   : > { %s4070_s18 = smov %s3026_s26  ;;  %23 = sbr.rel (!%p21_p11) target bundleno = 8 (0x8), region = 102 }
 0x8c3   :  { %1889 = vsyncpa [#allocation3], 1 }
 0x8c4   :  { %1891 = vsyncpa [#allocation3 + $0x1], 1 }
 0x8c5   :  { %1892 = vsyncpa [#allocation6], 1 }
 0x8c6   :  { %1894 = vsyncpa [#allocation6 + $0x1], 1 }
 0x8c7   :  { %1895 = vsyncpa [#allocation9], 1 }
 0x8c8   :  { %1896 = vsyncpa [#allocation4], 1 }
 0x8c9   :  { %1898 = vsyncpa [#allocation4 + $0x1], 1 }

</bundles_post_ra>
